<compile_context>
chip_gen: v7x
topology: tpu7x:2x2x1
jax: 0.10.0
libtpu: 0.0.40
codegen_flags: <defaults>
</compile_context>

<pallas_src>
import functools

import jax
import jax.numpy as jnp
from jax.experimental import pallas as pl
from jax.experimental.pallas import tpu as pltpu


LANES = 128


def _round_up(x, m):
    return ((x + m - 1) // m) * m


def _vmem_capacity_bytes(default=64 * 1024 * 1024):
    """Physical VMEM of the attached chip; falls back to the v7x 64 MiB floor."""
    try:
        info = pltpu.get_tpu_info()
        return int(getattr(info, "vmem_capacity_bytes", default))
    except Exception:
        return default


def gine_conv_kernel(coef_ref,   # (NP, 1)   f32   1 + eps - degree  (0 in padded rows)
                     h_ref,      # (NP, DP)  bf16  node features     (0 in padded rows/cols)
                     b_ref,      # (TM, NP)  bf16  incidence tile (streams over edges)
                     e_ref,      # (TM, DP)  bf16  edge-feature tile (streams over edges)
                     w1_ref, g1_ref, beta1_ref,   # (DP, DPI) bf16, (1, DPI) f32 x2
                     w2_ref, g2_ref, beta2_ref,   # (DPI, DP) bf16, (1, DP)  f32 x2
                     out_ref,    # (NP, DP)  f32
                     acc_ref,    # (NP, DP)  f32 scratch: residual + sum of B^T @ msg
                     *, inv_n, n_real):
    m = pl.program_id(0)

    @pl.when(m == 0)
    def _init():
        # Fold the (1 + eps - degree) * H residual straight into the accumulator.
        # coef is zero in padded node rows, so those rows stay exactly zero.
        acc_ref[...] = coef_ref[...] * h_ref[...].astype(jnp.float32)

    # ---- message passing over this edge tile (bf16 MXU operands, f32 accumulation) ----
    B = b_ref[...]                                                   # (TM, NP) 0/1 -> exact bf16
    node2edge = jnp.dot(B, h_ref[...],
                        preferred_element_type=jnp.float32)          # (TM, DP)
    msg = (e_ref[...].astype(jnp.float32) + node2edge).astype(jnp.bfloat16)
    # acc += B^T @ msg, contracting dim 0 of the SAME bf16 B tile (no materialized B^T).
    # TODO(synk): verify with pl.lower_as_mlir that this does not emit a per-step
    #   vxpose of the (TM, NP) tile; if it does, switch to pl.dot(B, msg, trans_a=True).
    acc_ref[...] += jax.lax.dot_general(
        B, msg,
        dimension_numbers=(((0,), (0,)), ((), ())),
        preferred_element_type=jnp.float32)                          # (NP, DP)

    # ---- MLP + BatchNorm on the last edge tile (all node rows resident -> global stats) ----
    @pl.when(m == pl.num_programs(0) - 1)
    def _finalize():
        x = acc_ref[...]                                             # (NP, DP), padded rows == 0
        row = jax.lax.broadcasted_iota(jnp.int32, (x.shape[0], 1), 0)
        row_mask = (row < n_real).astype(jnp.float32)                # (NP, 1) real-node mask

        # Layer 1: Linear(no bias) -> BatchNorm1d (fused, training stats) -> ReLU
        h1 = jnp.dot(x.astype(jnp.bfloat16), w1_ref[...],
                     preferred_element_type=jnp.float32)             # (NP, DPI)
        mu1 = jnp.sum(h1, axis=0, keepdims=True) * inv_n             # padded rows contribute 0
        var1 = jnp.maximum(
            jnp.sum(h1 * h1, axis=0, keepdims=True) * inv_n - mu1 * mu1, 0.0)
        scale1 = g1_ref[...] * jax.lax.rsqrt(var1 + 1e-5)
        shift1 = beta1_ref[...] - mu1 * scale1
        # Mask AFTER shift+ReLU: padded rows would otherwise pick up shift1 and
        # pollute the layer-2 BatchNorm statistics.
        h1 = jnp.maximum(h1 * scale1 + shift1, 0.0) * row_mask

        # Layer 2: Linear(no bias) -> BatchNorm1d (fused, training stats) -> ReLU
        h2 = jnp.dot(h1.astype(jnp.bfloat16), w2_ref[...],
                     preferred_element_type=jnp.float32)             # (NP, DP)
        mu2 = jnp.sum(h2, axis=0, keepdims=True) * inv_n
        var2 = jnp.maximum(
            jnp.sum(h2 * h2, axis=0, keepdims=True) * inv_n - mu2 * mu2, 0.0)
        scale2 = g2_ref[...] * jax.lax.rsqrt(var2 + 1e-5)
        shift2 = beta2_ref[...] - mu2 * scale2
        out_ref[...] = jnp.maximum(h2 * scale2 + shift2, 0.0)


def conv_layer_forward(node_rep, edge_attr, incidence, degree, epsilon,
                       w1, gamma1, beta1, w2, gamma2, beta2,
                       *, edge_tile=512):
    """ConvLayer forward.

    edge_tile: requested rows of the incidence/edge-feature stream per grid step.
    The effective tile is auto-clamped to a per-chip VMEM budget (v7x: ~48 MiB
    limit on 64 MiB physical VMEM; v5e/v6e: ~96 MiB on 128 MiB) and to M.
    """
    N, d = node_rep.shape
    M = edge_attr.shape[0]
    d_inner = w1.shape[1]

    # Lane-dense padded dimensions (all MXU operands end up multiples of 128 wide).
    DP = _round_up(max(d, 1), LANES)
    DPI = _round_up(max(d_inner, 1), LANES)
    NP = _round_up(max(N, 1), LANES)          # incidence lane dim / resident node rows

    # ---- per-chip VMEM budget -> effective edge tile ----
    vmem_cap = _vmem_capacity_bytes()
    vmem_limit = (3 * vmem_cap) // 4          # v7x: 48 MiB, v5e/v6e: 96 MiB
    resident = (NP * LANES * 4                # coef (lane-padded column)
                + NP * DP * 2                 # H (bf16, single-buffered)
                + DP * DPI * 2 + DPI * DP * 2  # W1, W2 (bf16)
                + 4 * 8 * max(DP, DPI) * 4    # gammas / betas (sublane-padded rows)
                + NP * DP * 4                 # f32 accumulator scratch
                + NP * DP * 4)                # f32 output block
    stream_per_row = 2 * (NP + DP) * 2        # double-buffered bf16 B row + E row
    budget = int(vmem_limit * 0.6)            # headroom for compiler-internal scratch
    tm_cap = max(16, (budget - resident) // stream_per_row)

    tm = min(int(edge_tile), int(tm_cap))
    tm = (tm // 128) * 128 if tm >= 128 else max(16, (tm // 16) * 16)
    tm = max(16, min(tm, _round_up(M, 16)))   # don't pad the edge axis past what M needs
    M_pad = _round_up(M, tm)

    def pad2(x, r, c, dtype=jnp.float32):
        x = jnp.asarray(x, jnp.float32)
        x = jnp.pad(x, ((0, r - x.shape[0]), (0, c - x.shape[1])))
        return x.astype(dtype)

    hbf = pad2(node_rep, NP, DP, jnp.bfloat16)              # node features (bf16, padded zeros)
    ebf = pad2(edge_attr, M_pad, DP, jnp.bfloat16)          # edge features (bf16 stream)
    bbf = pad2(incidence, M_pad, NP, jnp.bfloat16)          # 0/1 incidence -> exact in bf16
    coef = (1.0 + jnp.asarray(epsilon, jnp.float32).reshape(())
            - jnp.asarray(degree, jnp.float32).reshape(-1))
    coef = jnp.pad(coef, (0, NP - N)).reshape(NP, 1)        # zero in padded node rows
    w1p = pad2(w1, DP, DPI, jnp.bfloat16)
    w2p = pad2(w2, DPI, DP, jnp.bfloat16)
    g1p = pad2(jnp.asarray(gamma1).reshape(1, -1), 1, DPI)
    b1p = pad2(jnp.asarray(beta1).reshape(1, -1), 1, DPI)
    g2p = pad2(jnp.asarray(gamma2).reshape(1, -1), 1, DP)
    b2p = pad2(jnp.asarray(beta2).reshape(1, -1), 1, DP)

    grid = (M_pad // tm,)

    def const(shape):
        # Block index never changes -> single-buffered: DMA'd into VMEM once,
        # no wasted second buffer.
        return pl.BlockSpec(shape, lambda m: (0,) * len(shape),
                            pipeline_mode=pl.Buffered(1))

    kernel = functools.partial(gine_conv_kernel, inv_n=1.0 / N, n_real=N)

    out = pl.pallas_call(
        kernel,
        out_shape=jax.ShapeDtypeStruct((NP, DP), jnp.float32),
        grid_spec=pltpu.PrefetchScalarGridSpec(
            num_scalar_prefetch=0,
            grid=grid,
            in_specs=[
                const((NP, 1)),                                # coef
                const((NP, DP)),                               # H (bf16)
                pl.BlockSpec((tm, NP), lambda m: (m, 0)),      # incidence tile (streams)
                pl.BlockSpec((tm, DP), lambda m: (m, 0)),      # edge-feature tile (streams)
                const((DP, DPI)),                              # W1
                const((1, DPI)), const((1, DPI)),              # gamma1, beta1
                const((DPI, DP)),                              # W2
                const((1, DP)), const((1, DP)),                # gamma2, beta2
            ],
            out_specs=pl.BlockSpec((NP, DP), lambda m: (0, 0),
                                   pipeline_mode=pl.Buffered(1)),
            scratch_shapes=[pltpu.VMEM((NP, DP), jnp.float32)],
        ),
        compiler_params=pltpu.CompilerParams(
            # edge-tile axis is a reduction into the accumulator -> "arbitrary"
            dimension_semantics=("arbitrary",),
            vmem_limit_bytes=int(vmem_limit),
        ),
    )(coef, hbf, bbf, ebf, w1p, g1p, b1p, w2p, g2p, b2p)

    return out[:N, :d]


def reference_forward(H, E, B, degree, eps, w1, g1, b1, w2, g2, b2):
    """Pure-JAX f32 reference of the PyTorch module forward."""
    node2edge = B @ H
    msg = E + node2edge
    node_new = B.T @ msg
    x = node_new + (1.0 + eps.reshape(()) - degree.reshape(-1, 1)) * H

    h1 = x @ w1
    mu = h1.mean(0, keepdims=True)
    var = ((h1 - mu) ** 2).mean(0, keepdims=True)
    h1 = jnp.maximum((h1 - mu) * jax.lax.rsqrt(var + 1e-5) * g1 + b1, 0.0)

    h2 = h1 @ w2
    mu = h2.mean(0, keepdims=True)
    var = ((h2 - mu) ** 2).mean(0, keepdims=True)
    return jnp.maximum((h2 - mu) * jax.lax.rsqrt(var + 1e-5) * g2 + b2, 0.0)


if __name__ == "__main__":
    hidden_dim = 32
    inner_dim = hidden_dim * 2          # _inner_mlp_mult = 2
    N = 50                              # nodes (deliberately NOT a multiple of 8/128)
    M = 300                             # edges

    key = jax.random.PRNGKey(0)
    (k_h, k_e, k_src, k_dst,
     k_w1, k_w2, k_g1, k_b1, k_g2, k_b2) = jax.random.split(key, 10)

    node_rep = jax.random.normal(k_h, (N, hidden_dim), dtype=jnp.float32)
    edge_attr = jax.random.normal(k_e, (M, hidden_dim), dtype=jnp.float32)

    # random graph: edge e connects two distinct nodes
    src = jax.random.randint(k_src, (M,), 0, N)
    dst = (src + 1 + jax.random.randint(k_dst, (M,), 0, N - 1)) % N
    inc = jnp.zeros((M, N), dtype=jnp.float32)
    rows = jnp.arange(M)
    inc = inc.at[rows, src].set(1.0)
    inc = inc.at[rows, dst].set(1.0)
    degree = jnp.sum(inc, axis=0).reshape(-1, 1)        # (N, 1) == data.degree

    epsilon = jnp.zeros((1, 1), dtype=jnp.float32)      # Parameter([0.0])
    w1 = 0.1 * jax.random.normal(k_w1, (hidden_dim, inner_dim), dtype=jnp.float32)
    w2 = 0.1 * jax.random.normal(k_w2, (inner_dim, hidden_dim), dtype=jnp.float32)
    gamma1 = 1.0 + 0.1 * jax.random.normal(k_g1, (1, inner_dim), dtype=jnp.float32)
    beta1 = 0.1 * jax.random.normal(k_b1, (1, inner_dim), dtype=jnp.float32)
    gamma2 = 1.0 + 0.1 * jax.random.normal(k_g2, (1, hidden_dim), dtype=jnp.float32)
    beta2 = 0.1 * jax.random.normal(k_b2, (1, hidden_dim), dtype=jnp.float32)

    ref = reference_forward(node_rep, edge_attr, inc, degree, epsilon,
                            w1, gamma1, beta1, w2, gamma2, beta2)

    # Default (large, VMEM-budgeted) edge tile -> the whole edge axis in one pass here.
    out = conv_layer_forward(node_rep, edge_attr, inc, degree, epsilon,
                             w1, gamma1, beta1, w2, gamma2, beta2)
    out = jax.block_until_ready(out)
    assert out.shape == (N, hidden_dim)
    assert bool(jnp.all(jnp.isfinite(out)))
    # bf16 MXU inputs (f32 accumulation) -> loose tolerance vs. the pure-f32 reference
    assert float(jnp.max(jnp.abs(out - ref))) < 0.25

    # Small tile override -> several grid steps; exercises the streamed accumulator path.
    out_tiled = conv_layer_forward(node_rep, edge_attr, inc, degree, epsilon,
                                   w1, gamma1, beta1, w2, gamma2, beta2,
                                   edge_tile=64)
    out_tiled = jax.block_until_ready(out_tiled)
    assert bool(jnp.all(jnp.isfinite(out_tiled)))
    assert float(jnp.max(jnp.abs(out_tiled - ref))) < 0.25

    print("KERNEL_OK")
</pallas_src>

<mosaic_0001>
module attributes {stable_mosaic.version = 11 : i64} {
  func.func @gine_conv_kernel(%arg0: i32, %arg1: memref<128x1xf32, #tpu.memory_space<vmem>>, %arg2: memref<128x128xbf16, #tpu.memory_space<vmem>>, %arg3: memref<304x128xbf16, #tpu.memory_space<vmem>>, %arg4: memref<304x128xbf16, #tpu.memory_space<vmem>>, %arg5: memref<128x128xbf16, #tpu.memory_space<vmem>>, %arg6: memref<1x128xf32, #tpu.memory_space<vmem>>, %arg7: memref<1x128xf32, #tpu.memory_space<vmem>>, %arg8: memref<128x128xbf16, #tpu.memory_space<vmem>>, %arg9: memref<1x128xf32, #tpu.memory_space<vmem>>, %arg10: memref<1x128xf32, #tpu.memory_space<vmem>>, %arg11: memref<128x128xf32, #tpu.memory_space<vmem>>, %arg12: memref<128x128xf32, #tpu.memory_space<vmem>>) attributes {dimension_semantics = [#tpu.dimension_semantics<arbitrary>], iteration_bounds = array<i64: 1>, scalar_prefetch = 0 : i64, scratch_operands = 1 : i64, tpu.core_type = #tpu.core_type<tc>, window_params = [{pipeline_mode = #tpu.pipeline_mode<synchronous>, transform_indices = @transform_0, window_bounds = array<i64: 128, 1>}, {pipeline_mode = #tpu.pipeline_mode<synchronous>, transform_indices = @transform_1, window_bounds = array<i64: 128, 128>}, {transform_indices = @transform_2, window_bounds = array<i64: 304, 128>}, {transform_indices = @transform_3, window_bounds = array<i64: 304, 128>}, {pipeline_mode = #tpu.pipeline_mode<synchronous>, transform_indices = @transform_4, window_bounds = array<i64: 128, 128>}, {pipeline_mode = #tpu.pipeline_mode<synchronous>, transform_indices = @transform_5, window_bounds = array<i64: 1, 128>}, {pipeline_mode = #tpu.pipeline_mode<synchronous>, transform_indices = @transform_6, window_bounds = array<i64: 1, 128>}, {pipeline_mode = #tpu.pipeline_mode<synchronous>, transform_indices = @transform_7, window_bounds = array<i64: 128, 128>}, {pipeline_mode = #tpu.pipeline_mode<synchronous>, transform_indices = @transform_8, window_bounds = array<i64: 1, 128>}, {pipeline_mode = #tpu.pipeline_mode<synchronous>, transform_indices = @transform_9, window_bounds = array<i64: 1, 128>}, {pipeline_mode = #tpu.pipeline_mode<synchronous>, transform_indices = @transform_10, window_bounds = array<i64: 128, 128>}]} {
    %c0_i32 = arith.constant 0 : i32
    %0 = arith.cmpi eq, %arg0, %c0_i32 : i32
    %1 = arith.extui %0 : i1 to i32
    %c0_i32_0 = arith.constant 0 : i32
    %2 = arith.cmpi ne, %1, %c0_i32_0 : i32
    scf.if %2 {
      %c0_13 = arith.constant 0 : index
      %c0_14 = arith.constant 0 : index
      %17 = vector.load %arg1[%c0_13, %c0_14] : memref<128x1xf32, #tpu.memory_space<vmem>>, vector<128x1xf32>
      %c0_15 = arith.constant 0 : index
      %c0_16 = arith.constant 0 : index
      %18 = vector.load %arg2[%c0_15, %c0_16] : memref<128x128xbf16, #tpu.memory_space<vmem>>, vector<128x128xbf16>
      %19 = arith.extf %18 : vector<128x128xbf16> to vector<128x128xf32>
      %20 = vector.broadcast %17 : vector<128x1xf32> to vector<128x128xf32>
      %21 = arith.mulf %20, %19 : vector<128x128xf32>
      %c0_17 = arith.constant 0 : index
      %c0_18 = arith.constant 0 : index
      %22 = vector.load %arg12[%c0_17, %c0_18] : memref<128x128xf32, #tpu.memory_space<vmem>>, vector<128x128xf32>
      tpu.vector_store %arg12[%c0_17, %c0_18], %21 {strides = array<i32>} : memref<128x128xf32, #tpu.memory_space<vmem>>, vector<128x128xf32>,
    } else {
    }
    %c0 = arith.constant 0 : index
    %c0_1 = arith.constant 0 : index
    %3 = vector.load %arg3[%c0, %c0_1] : memref<304x128xbf16, #tpu.memory_space<vmem>>, vector<304x128xbf16>
    %c0_2 = arith.constant 0 : index
    %c0_3 = arith.constant 0 : index
    %4 = vector.load %arg2[%c0_2, %c0_3] : memref<128x128xbf16, #tpu.memory_space<vmem>>, vector<128x128xbf16>
    %cst = arith.constant dense<0.000000e+00> : vector<304x128xf32>
    %5 = tpu.matmul %3, %4, %cst {dimension_numbers = #tpu.dot_dimension_numbers<[1], [0], [0], [1], [0, 0, 1, 1], [], []>} : vector<304x128xbf16>, vector<128x128xbf16>, vector<304x128xf32> -> vector<304x128xf32>
    %c0_4 = arith.constant 0 : index
    %c0_5 = arith.constant 0 : index
    %6 = vector.load %arg4[%c0_4, %c0_5] : memref<304x128xbf16, #tpu.memory_space<vmem>>, vector<304x128xbf16>
    %7 = arith.extf %6 : vector<304x128xbf16> to vector<304x128xf32>
    %8 = arith.addf %7, %5 : vector<304x128xf32>
    %9 = arith.truncf %8 : vector<304x128xf32> to vector<304x128xbf16>
    %c0_6 = arith.constant 0 : index
    %c0_7 = arith.constant 0 : index
    %10 = vector.load %arg12[%c0_6, %c0_7] : memref<128x128xf32, #tpu.memory_space<vmem>>, vector<128x128xf32>
    %cst_8 = arith.constant dense<0.000000e+00> : vector<128x128xf32>
    %11 = tpu.matmul %3, %9, %cst_8 {dimension_numbers = #tpu.dot_dimension_numbers<[0], [0], [1], [1], [0, 1, 1, 1], [], []>} : vector<304x128xbf16>, vector<304x128xbf16>, vector<128x128xf32> -> vector<128x128xf32>
    %12 = arith.addf %10, %11 : vector<128x128xf32>
    %c0_9 = arith.constant 0 : index
    %c0_10 = arith.constant 0 : index
    %13 = vector.load %arg12[%c0_9, %c0_10] : memref<128x128xf32, #tpu.memory_space<vmem>>, vector<128x128xf32>
    tpu.vector_store %arg12[%c0_9, %c0_10], %12 {strides = array<i32>} : memref<128x128xf32, #tpu.memory_space<vmem>>, vector<128x128xf32>,
    %c0_i32_11 = arith.constant 0 : i32
    %14 = arith.cmpi eq, %arg0, %c0_i32_11 : i32
    %15 = arith.extui %14 : i1 to i32
    %c0_i32_12 = arith.constant 0 : i32
    %16 = arith.cmpi ne, %15, %c0_i32_12 : i32
    scf.if %16 {
      %c0_13 = arith.constant 0 : index
      %c0_14 = arith.constant 0 : index
      %17 = vector.load %arg12[%c0_13, %c0_14] : memref<128x128xf32, #tpu.memory_space<vmem>>, vector<128x128xf32>
      %18 = tpu.iota {dimensions = array<i32: 0>} : vector<128x1xi32>
      %c50_i32 = arith.constant 50 : i32
      %19 = vector.broadcast %c50_i32 : i32 to vector<128x1xi32>
      %20 = arith.cmpi slt, %18, %19 : vector<128x1xi32>
      %21 = arith.extui %20 : vector<128x1xi1> to vector<128x1xi32>
      %22 = arith.sitofp %21 : vector<128x1xi32> to vector<128x1xf32>
      %23 = arith.truncf %17 : vector<128x128xf32> to vector<128x128xbf16>
      %c0_15 = arith.constant 0 : index
      %c0_16 = arith.constant 0 : index
      %24 = vector.load %arg5[%c0_15, %c0_16] : memref<128x128xbf16, #tpu.memory_space<vmem>>, vector<128x128xbf16>
      %cst_17 = arith.constant dense<0.000000e+00> : vector<128x128xf32>
      %25 = tpu.matmul %23, %24, %cst_17 {dimension_numbers = #tpu.dot_dimension_numbers<[1], [0], [0], [1], [0, 0, 1, 1], [], []>} : vector<128x128xbf16>, vector<128x128xbf16>, vector<128x128xf32> -> vector<128x128xf32>
      %cst_18 = arith.constant dense<0.000000e+00> : vector<128xf32>
      %26 = vector.multi_reduction <add>, %25, %cst_18 [0] : vector<128x128xf32> to vector<128xf32>
      %27 = vector.shape_cast %26 : vector<128xf32> to vector<1x128xf32>
      %cst_19 = arith.constant 2.000000e-02 : f32
      %28 = vector.broadcast %cst_19 : f32 to vector<1x128xf32>
      %29 = arith.mulf %27, %28 : vector<1x128xf32>
      %30 = arith.mulf %25, %25 : vector<128x128xf32>
      %cst_20 = arith.constant dense<0.000000e+00> : vector<128xf32>
      %31 = vector.multi_reduction <add>, %30, %cst_20 [0] : vector<128x128xf32> to vector<128xf32>
      %32 = vector.shape_cast %31 : vector<128xf32> to vector<1x128xf32>
      %cst_21 = arith.constant 2.000000e-02 : f32
      %33 = vector.broadcast %cst_21 : f32 to vector<1x128xf32>
      %34 = arith.mulf %32, %33 : vector<1x128xf32>
      %35 = arith.mulf %29, %29 : vector<1x128xf32>
      %36 = arith.subf %34, %35 : vector<1x128xf32>
      %cst_22 = arith.constant 0.000000e+00 : f32
      %37 = vector.broadcast %cst_22 : f32 to vector<1x128xf32>
      %38 = arith.maximumf %36, %37 : vector<1x128xf32>
      %c0_23 = arith.constant 0 : index
      %c0_24 = arith.constant 0 : index
      %39 = vector.load %arg6[%c0_23, %c0_24] : memref<1x128xf32, #tpu.memory_space<vmem>>, vector<1x128xf32>
      %cst_25 = arith.constant 9.99999974E-6 : f32
      %40 = vector.broadcast %cst_25 : f32 to vector<1x128xf32>
      %41 = arith.addf %38, %40 : vector<1x128xf32>
      %42 = math.rsqrt %41 : vector<1x128xf32>
      %43 = arith.mulf %39, %42 : vector<1x128xf32>
      %c0_26 = arith.constant 0 : index
      %c0_27 = arith.constant 0 : index
      %44 = vector.load %arg7[%c0_26, %c0_27] : memref<1x128xf32, #tpu.memory_space<vmem>>, vector<1x128xf32>
      %45 = arith.mulf %29, %43 : vector<1x128xf32>
      %46 = arith.subf %44, %45 : vector<1x128xf32>
      %47 = vector.broadcast %43 : vector<1x128xf32> to vector<128x128xf32>
      %48 = arith.mulf %25, %47 : vector<128x128xf32>
      %49 = vector.broadcast %46 : vector<1x128xf32> to vector<128x128xf32>
      %50 = arith.addf %48, %49 : vector<128x128xf32>
      %cst_28 = arith.constant 0.000000e+00 : f32
      %51 = vector.broadcast %cst_28 : f32 to vector<128x128xf32>
      %52 = arith.maximumf %50, %51 : vector<128x128xf32>
      %53 = vector.broadcast %22 : vector<128x1xf32> to vector<128x128xf32>
      %54 = arith.mulf %52, %53 : vector<128x128xf32>
      %55 = arith.truncf %54 : vector<128x128xf32> to vector<128x128xbf16>
      %c0_29 = arith.constant 0 : index
      %c0_30 = arith.constant 0 : index
      %56 = vector.load %arg8[%c0_29, %c0_30] : memref<128x128xbf16, #tpu.memory_space<vmem>>, vector<128x128xbf16>
      %cst_31 = arith.constant dense<0.000000e+00> : vector<128x128xf32>
      %57 = tpu.matmul %55, %56, %cst_31 {dimension_numbers = #tpu.dot_dimension_numbers<[1], [0], [0], [1], [0, 0, 1, 1], [], []>} : vector<128x128xbf16>, vector<128x128xbf16>, vector<128x128xf32> -> vector<128x128xf32>
      %cst_32 = arith.constant dense<0.000000e+00> : vector<128xf32>
      %58 = vector.multi_reduction <add>, %57, %cst_32 [0] : vector<128x128xf32> to vector<128xf32>
      %59 = vector.shape_cast %58 : vector<128xf32> to vector<1x128xf32>
      %cst_33 = arith.constant 2.000000e-02 : f32
      %60 = vector.broadcast %cst_33 : f32 to vector<1x128xf32>
      %61 = arith.mulf %59, %60 : vector<1x128xf32>
      %62 = arith.mulf %57, %57 : vector<128x128xf32>
      %cst_34 = arith.constant dense<0.000000e+00> : vector<128xf32>
      %63 = vector.multi_reduction <add>, %62, %cst_34 [0] : vector<128x128xf32> to vector<128xf32>
      %64 = vector.shape_cast %63 : vector<128xf32> to vector<1x128xf32>
      %cst_35 = arith.constant 2.000000e-02 : f32
      %65 = vector.broadcast %cst_35 : f32 to vector<1x128xf32>
      %66 = arith.mulf %64, %65 : vector<1x128xf32>
      %67 = arith.mulf %61, %61 : vector<1x128xf32>
      %68 = arith.subf %66, %67 : vector<1x128xf32>
      %cst_36 = arith.constant 0.000000e+00 : f32
      %69 = vector.broadcast %cst_36 : f32 to vector<1x128xf32>
      %70 = arith.maximumf %68, %69 : vector<1x128xf32>
      %c0_37 = arith.constant 0 : index
      %c0_38 = arith.constant 0 : index
      %71 = vector.load %arg9[%c0_37, %c0_38] : memref<1x128xf32, #tpu.memory_space<vmem>>, vector<1x128xf32>
      %cst_39 = arith.constant 9.99999974E-6 : f32
      %72 = vector.broadcast %cst_39 : f32 to vector<1x128xf32>
      %73 = arith.addf %70, %72 : vector<1x128xf32>
      %74 = math.rsqrt %73 : vector<1x128xf32>
      %75 = arith.mulf %71, %74 : vector<1x128xf32>
      %c0_40 = arith.constant 0 : index
      %c0_41 = arith.constant 0 : index
      %76 = vector.load %arg10[%c0_40, %c0_41] : memref<1x128xf32, #tpu.memory_space<vmem>>, vector<1x128xf32>
      %77 = arith.mulf %61, %75 : vector<1x128xf32>
      %78 = arith.subf %76, %77 : vector<1x128xf32>
      %79 = vector.broadcast %75 : vector<1x128xf32> to vector<128x128xf32>
      %80 = arith.mulf %57, %79 : vector<128x128xf32>
      %81 = vector.broadcast %78 : vector<1x128xf32> to vector<128x128xf32>
      %82 = arith.addf %80, %81 : vector<128x128xf32>
      %cst_42 = arith.constant 0.000000e+00 : f32
      %83 = vector.broadcast %cst_42 : f32 to vector<128x128xf32>
      %84 = arith.maximumf %82, %83 : vector<128x128xf32>
      %c0_43 = arith.constant 0 : index
      %c0_44 = arith.constant 0 : index
      %85 = vector.load %arg11[%c0_43, %c0_44] : memref<128x128xf32, #tpu.memory_space<vmem>>, vector<128x128xf32>
      tpu.vector_store %arg11[%c0_43, %c0_44], %84 {strides = array<i32>} : memref<128x128xf32, #tpu.memory_space<vmem>>, vector<128x128xf32>,
    } else {
    }
    return
  }
  func.func @transform_0(%arg0: i32) -> (i32, i32) {
    %c0_i32 = arith.constant 0 : i32
    %c0_i32_0 = arith.constant 0 : i32
    %c0_i32_1 = arith.constant 0 : i32
    return %c0_i32, %c0_i32_0 : i32, i32
  }
  func.func @transform_1(%arg0: i32) -> (i32, i32) {
    %c0_i32 = arith.constant 0 : i32
    %c0_i32_0 = arith.constant 0 : i32
    %c0_i32_1 = arith.constant 0 : i32
    return %c0_i32, %c0_i32_0 : i32, i32
  }
  func.func @transform_2(%arg0: i32) -> (i32, i32) {
    %c0_i32 = arith.constant 0 : i32
    %c0_i32_0 = arith.constant 0 : i32
    return %arg0, %c0_i32 : i32, i32
  }
  func.func @transform_3(%arg0: i32) -> (i32, i32) {
    %c0_i32 = arith.constant 0 : i32
    %c0_i32_0 = arith.constant 0 : i32
    return %arg0, %c0_i32 : i32, i32
  }
  func.func @transform_4(%arg0: i32) -> (i32, i32) {
    %c0_i32 = arith.constant 0 : i32
    %c0_i32_0 = arith.constant 0 : i32
    %c0_i32_1 = arith.constant 0 : i32
    return %c0_i32, %c0_i32_0 : i32, i32
  }
  func.func @transform_5(%arg0: i32) -> (i32, i32) {
    %c0_i32 = arith.constant 0 : i32
    %c0_i32_0 = arith.constant 0 : i32
    %c0_i32_1 = arith.constant 0 : i32
    return %c0_i32, %c0_i32_0 : i32, i32
  }
  func.func @transform_6(%arg0: i32) -> (i32, i32) {
    %c0_i32 = arith.constant 0 : i32
    %c0_i32_0 = arith.constant 0 : i32
    %c0_i32_1 = arith.constant 0 : i32
    return %c0_i32, %c0_i32_0 : i32, i32
  }
  func.func @transform_7(%arg0: i32) -> (i32, i32) {
    %c0_i32 = arith.constant 0 : i32
    %c0_i32_0 = arith.constant 0 : i32
    %c0_i32_1 = arith.constant 0 : i32
    return %c0_i32, %c0_i32_0 : i32, i32
  }
  func.func @transform_8(%arg0: i32) -> (i32, i32) {
    %c0_i32 = arith.constant 0 : i32
    %c0_i32_0 = arith.constant 0 : i32
    %c0_i32_1 = arith.constant 0 : i32
    return %c0_i32, %c0_i32_0 : i32, i32
  }
  func.func @transform_9(%arg0: i32) -> (i32, i32) {
    %c0_i32 = arith.constant 0 : i32
    %c0_i32_0 = arith.constant 0 : i32
    %c0_i32_1 = arith.constant 0 : i32
    return %c0_i32, %c0_i32_0 : i32, i32
  }
  func.func @transform_10(%arg0: i32) -> (i32, i32) {
    %c0_i32 = arith.constant 0 : i32
    %c0_i32_0 = arith.constant 0 : i32
    %c0_i32_1 = arith.constant 0 : i32
    return %c0_i32, %c0_i32_0 : i32, i32
  }
}

</mosaic_0001>

<bundles_post_ra>
// kernel: tpu_custom_call.1
= control target key start
LH: loop header
LB: loop body
LE: loop exit
PB: predicated region body
PF: predicated region fallthrough
CT: control target
= control target key end

     0   :  { %15 = vsyncpa [#allocation4], 0  ;;  %s3071_s0 = inlined_call_operand.vmem [shape: f32[128,1], index: 0, kind: input, shape index: {}]   ;;  %s3072_s1 = inlined_call_operand.vmem [shape: bf16[128,128], index: 1, kind: input, shape index: {}]   ;;  %s3073_s2 = inlined_call_operand.hbm [shape: bf16[304,128], index: 2, kind: input, shape index: {}]   ;;  %s3074_s3 = inlined_call_operand.hbm [shape: bf16[304,128], index: 3, kind: input, shape index: {}]   ;;  %s3075_s4 = inlined_call_operand.vmem [shape: bf16[128,128], index: 4, kind: input, shape index: {}]   ;;  %s3076_s5 = inlined_call_operand.vmem [shape: f32[1,128], index: 5, kind: input, shape index: {}]   ;;  %s3077_s6 = inlined_call_operand.vmem [shape: f32[1,128], index: 6, kind: input, shape index: {}]   ;;  %s3078_s7 = inlined_call_operand.hbm [shape: bf16[128,128], index: 7, kind: input, shape index: {}]   ;;  %s3079_s8 = inlined_call_operand.vmem [shape: f32[1,128], index: 8, kind: input, shape index: {}]   ;;  %s3080_s9 = inlined_call_operand.vmem [shape: f32[1,128], index: 9, kind: input, shape index: {}]   ;;  %s3081_s10 = inlined_call_operand.hbm [shape: f32[128,128], index: 10, kind: output, shape index: {}]  }
   0x1   :  { %16 = vsyncpa [#allocation7], 0 }
   0x2   :  { %17 = vsyncpa [#allocation5], 0  ;;  %s2474_s13 = smov [#allocation6]   ;;  %s2475_s15 = smov [#allocation3]  }
   0x3   :  { %s39_s14 = sshll.u32 %s2474_s13, 4  ;;  %s27_s16 = sshll.u32 %s2475_s15, 4  ;;  %s40_s14 = int_to_ptr.vmem [resolvable:$true] %s39_s14  ;;  %s2540_s16 = int_to_ptr.vmem [resolvable:$true] %s27_s16 }
   0x4   :  { %s2380_s19 = scalar_lea.hbm %s3074_s3, 2432 }
   0x5   :  { %p2381_p0 = scmp.ne.s32.totalorder %s3074_s3, %s2380_s19  ;;  %p2384_p1 = scmp.lt.u32.totalorder %s2380_s19, %s3074_s3 }
   0x7   :  { %p2386_p2 = pnand %p2384_p1, %p2381_p0 }
   0x9   :  { %2389 = shalt.err (!%p2386_p2)
}
   0xa   :  { %s2390_s24 = scalar_lea.vmem %s40_s14, 2432  ;;  %p2395_p4 = scmp.lt.s32.totalorder %s40_s14, %s40_s14 }
   0xb   :  { %p2391_p3 = scmp.ne.s32.totalorder %s40_s14, %s2390_s24  ;;  %p2396_p5 = scmp.lt.s32.totalorder %s2390_s24, %s2390_s24 }
   0xd   :  { %p2397_p6 = por %p2396_p5, %p2395_p4 }
   0xf   :  { %p2398_p7 = pnand %p2397_p6, %p2391_p3 }
  0x11   :  { %2401 = shalt.err (!%p2398_p7)
}
  0x12   :  { %s2476_s25 = smov 64   ;;  %s2477_s26 = smov 4  }
  0x13   :  { %45 = dma.hbm_to_vmem [thread:$0]  %s3074_s3, 2432, %s40_s14, [#allocation7], %s2476_s25, %s2476_s25, %s2477_s26  }
  0x14   :  { %s2402_s11 = scalar_lea.hbm %s3073_s2, 2432 }
  0x15   :  { %p2403_p8 = scmp.ne.s32.totalorder %s3073_s2, %s2402_s11  ;;  %p2406_p9 = scmp.lt.u32.totalorder %s2402_s11, %s3073_s2 }
  0x17   :  { %p2408_p10 = pnand %p2406_p9, %p2403_p8 }
  0x19   :  { %2411 = shalt.err (!%p2408_p10)
}
  0x1a   :  { %s2412_s18 = scalar_lea.vmem %s2540_s16, 2432  ;;  %p2417_p12 = scmp.lt.s32.totalorder %s2540_s16, %s2540_s16 }
  0x1b   :  { %p2413_p11 = scmp.ne.s32.totalorder %s2540_s16, %s2412_s18  ;;  %p2418_p13 = scmp.lt.s32.totalorder %s2412_s18, %s2412_s18 }
  0x1d   :  { %p2419_p0 = por %p2418_p13, %p2417_p12 }
  0x1f   :  { %p2420_p1 = pnand %p2419_p0, %p2413_p11 }
  0x21   :  { %2423 = shalt.err (!%p2420_p1)
}
  0x22   :  { %33 = dma.hbm_to_vmem [thread:$0]  %s3073_s2, 2432, %s2540_s16, [#allocation4], %s2476_s25, %s2476_s25, %s2477_s26  }
  0x23   :  { %s2478_s19 = smov [#allocation8]   ;;  %s2424_s23 = scalar_lea.hbm %s3078_s7, 1024 }
  0x24   :  { %s57_s20 = sshll.u32 %s2478_s19, 4  ;;  %p2425_p2 = scmp.ne.s32.totalorder %s3078_s7, %s2424_s23  ;;  %s58_s20 = int_to_ptr.vmem [resolvable:$true] %s57_s20 }
  0x25   :  { %p2428_p3 = scmp.lt.u32.totalorder %s2424_s23, %s3078_s7 }
  0x27   :  { %p2430_p4 = pnand %p2428_p3, %p2425_p2 }
  0x29   :  { %2433 = shalt.err (!%p2430_p4)
}
  0x2a   :  { %s2434_s30 = scalar_lea.vmem %s58_s20, 1024  ;;  %p2439_p6 = scmp.lt.s32.totalorder %s58_s20, %s58_s20 }
  0x2b   :  { %p2435_p5 = scmp.ne.s32.totalorder %s58_s20, %s2434_s30  ;;  %p2440_p7 = scmp.lt.s32.totalorder %s2434_s30, %s2434_s30 }
  0x2d   :  { %p2441_p8 = por %p2440_p7, %p2439_p6 }
  0x2f   :  { %p2442_p9 = pnand %p2441_p8, %p2435_p5 }
  0x31   :  { %2445 = shalt.err (!%p2442_p9)
}
  0x32   :  { %63 = dma.hbm_to_vmem [thread:$0]  %s3078_s7, 1024, %s58_s20, [#allocation7], %s2476_s25, %s2476_s25, %s2477_s26  }
  0x33   :  { %2468 = dma.done.wait [#allocation4], 2432  }
  0x34   :  { %2469 = vsyncadd [#allocation4], 4294964864 }
  0x35   :  { %2470 = dma.done.wait [#allocation7], 3456  }
  0x36   :  { %2471 = vsyncadd [#allocation7], 4294963840  ;;  %v2479_v0 = vmov 0.0   ;;  %vm2480_vm0 = vmmov 0   ;;  %v2333_v1 = vld [vmem:[%s3072_s1] sm:$0xff]   ;;  %v2334_v2 = vld [vmem:[%s3072_s1 + $0x8] sm:$0xff]  }
  0x37   :  { %2142 = vmatprep.subr.bf16.mxu0 %v2479_v0  ;;  %2158 = vmatprep.mubr.msk.bf16.mxu0 %vm2480_vm0, %v2479_v0  ;;  %v2335_v3 = vld [vmem:[%s3072_s1 + $0x10] sm:$0xff]   ;;  %v2341_v4 = vld [vmem:[#allocation3] sm:$0xff]   ;;  %v2336_v5 = vld [vmem:[%s3072_s1 + $0x18] sm:$0xff]   ;;  %vm840_vm1 = vcmask 392192  }
  0x38   :  { %2143 = vmatpush3.bf16.msra.mxu0 %v2333_v1  ;;  %792 = vxpose.xlu1.c.b16.start [1/8] %v2341_v4, 128  ;;  %v2342_v6 = vld [vmem:[#allocation3 + $0x8] sm:$0xff]   ;;  %v2337_v7 = vld [vmem:[%s3072_s1 + $0x20] sm:$0xff]   ;;  %v2343_v9 = vld [vmem:[#allocation3 + $0x10] sm:$0xff]  }
  0x39   :  { %2144 = vmatprep.subr.bf16.mxu0 %v2479_v0  ;;  %v2349_v8 = vld [vmem:[#allocation3 + $0x40] sm:$0xff]   ;;  %v2338_v10 = vld [vmem:[%s3072_s1 + $0x28] sm:$0xff]   ;;  %v2344_v12 = vld [vmem:[#allocation3 + $0x18] sm:$0xff]  }
  0x3a   :  { %808 = vxpose.xlu0.c.b16.start [1/8] %v2349_v8, 128  ;;  %v2350_v11 = vld [vmem:[#allocation3 + $0x48] sm:$0xff]   ;;  %v2339_v13 = vld [vmem:[%s3072_s1 + $0x30] sm:$0xff]   ;;  %v2345_v14 = vld [vmem:[#allocation3 + $0x20] sm:$0xff]  }
  0x3b   :  { %v2351_v15 = vld [vmem:[#allocation3 + $0x50] sm:$0xff]   ;;  %v2340_v16 = vld [vmem:[%s3072_s1 + $0x38] sm:$0xff]   ;;  %v2346_v18 = vld [vmem:[#allocation3 + $0x28] sm:$0xff]  }
  0x3c   :  { %2145 = vmatpush3.bf16.msra.mxu0 %v2334_v2  ;;  %793 = vxpose.xlu1.c.b16.cont [2/8] %v2342_v6, 128  ;;  %v2352_v17 = vld [vmem:[#allocation3 + $0x58] sm:$0xff]   ;;  %v2353_v19 = vld [vmem:[#allocation3 + $0x60] sm:$0xff]   ;;  %v2347_v20 = vld [vmem:[#allocation3 + $0x30] sm:$0xff]  }
  0x3d   :  { %2146 = vmatprep.subr.bf16.mxu0 %v2479_v0  ;;  %v2354_v21 = vld [vmem:[#allocation3 + $0x68] sm:$0xff]   ;;  %v2348_v22 = vld [vmem:[#allocation3 + $0x38] sm:$0xff]   ;;  %v2355_v23 = vld [vmem:[#allocation3 + $0x70] sm:$0xff]  }
  0x3e   :  { %809 = vxpose.xlu0.c.b16.cont [2/8] %v2350_v11, 128  ;;  %v2356_v24 = vld [vmem:[#allocation3 + $0x78] sm:$0xff]   ;;  %v2357_v25 = vld [vmem:[#allocation3 + $0x80] sm:$0xff]   ;;  %v2358_v26 = vld [vmem:[#allocation3 + $0x88] sm:$0xff]  }
  0x3f   :  { %v2359_v27 = vld [vmem:[#allocation3 + $0x90] sm:$0xff]   ;;  %v1908_v28 = vld [vmem:[#allocation6] sm:$0xff]   ;;  %v1990_v38 = vld [vmem:[#allocation6 + $0x8] sm:$0xff]  }
  0x40   :  { %2147 = vmatpush3.bf16.msra.mxu0 %v2335_v3  ;;  %794 = vxpose.xlu1.c.b16.cont [3/8] %v2343_v9, 128  ;;  %v1909_v29 = vunpack.c.l.bf16 %v1908_v28  ;;  %v1910_v30 = vunpack.c.h.bf16 %v1908_v28  ;;  %v1913_v40 = vunpack.c.l.bf16 %v1990_v38  ;;  %v1914_v41 = vunpack.c.h.bf16 %v1990_v38  ;;  %v1991_v48 = vld [vmem:[#allocation6 + $0x10] sm:$0xff]   ;;  %v1992_v58 = vld [vmem:[#allocation6 + $0x18] sm:$0xff]  }
  0x41   :  { %2148 = vmatprep.subr.bf16.mxu0 %v2479_v0  ;;  %v1917_v50 = vunpack.c.l.bf16 %v1991_v48  ;;  %v1918_v51 = vunpack.c.h.bf16 %v1991_v48  ;;  %v1921_v60 = vunpack.c.l.bf16 %v1992_v58  ;;  %v1922_v61 = vunpack.c.h.bf16 %v1992_v58 }
  0x42   :  { %810 = vxpose.xlu0.c.b16.cont [3/8] %v2351_v15, 128 }
  0x44   :  { %2149 = vmatpush3.bf16.msra.mxu0 %v2336_v5  ;;  %795 = vxpose.xlu1.c.b16.cont [4/8] %v2344_v12, 128  ;;  %v1993_v5 = vld [vmem:[#allocation6 + $0x20] sm:$0xff]  }
  0x45   :  { %2150 = vmatprep.subr.bf16.mxu0 %v2479_v0 }
  0x46   :  { %811 = vxpose.xlu0.c.b16.cont [4/8] %v2352_v17, 128 }
  0x48   :  { %2151 = vmatpush3.bf16.msra.mxu0 %v2337_v7  ;;  %796 = vxpose.xlu1.c.b16.cont [5/8] %v2345_v14, 128  ;;  %v1925_v7 = vunpack.c.l.bf16 %v1993_v5 }
  0x49   :  { %2152 = vmatprep.subr.bf16.mxu0 %v2479_v0 }
  0x4a   :  { %812 = vxpose.xlu0.c.b16.cont [5/8] %v2353_v19, 128 }
  0x4c   :  { %2153 = vmatpush3.bf16.msra.mxu0 %v2338_v10  ;;  %797 = vxpose.xlu1.c.b16.cont [6/8] %v2346_v18, 128 }
  0x4d   :  { %2154 = vmatprep.subr.bf16.mxu0 %v2479_v0 }
  0x4e   :  { %813 = vxpose.xlu0.c.b16.cont [6/8] %v2354_v21, 128 }
  0x50   :  { %2155 = vmatpush3.bf16.msra.mxu0 %v2339_v13  ;;  %798 = vxpose.xlu1.c.b16.cont [7/8] %v2347_v20, 128 }
  0x51   :  { %2156 = vmatprep.subr.bf16.mxu0 %v2479_v0 }
  0x52   :  { %814 = vxpose.xlu0.c.b16.cont [7/8] %v2355_v23, 128 }
  0x54   :  { %2157 = vmatpush3.bf16.msra.mxu0 %v2340_v16  ;;  %799 = vxpose.xlu1.c.b16.end [8/8] %v2348_v22, 128 }
  0x56   :  { %815 = vxpose.xlu0.c.b16.end [8/8] %v2356_v24, 128 }
  0x57   :  { %2159 = vmatmul.mubr.bf16.vlgmr.msra.gmra.mrb[0].mxu0 %v2341_v4 }
  0x58   :  { %2162 = vmatprep.mubr.msk.bf16.mxu0 %vm2480_vm0, %v2479_v0 }
  0x5a   :  { %824 = vxpose.xlu0.c.b16.start [1/3] (short) %v2357_v25, 128 }
  0x5e   :  { %825 = vxpose.xlu0.c.b16.cont [2/3] (short) %v2358_v26, 128 }
  0x5f   :  { %2163 = vmatmul.mubr.bf16.gmra.mrb[4].mxu0 %v2342_v6 }
  0x60   :  { %2166 = vmatprep.mubr.msk.bf16.mxu0 %vm2480_vm0, %v2479_v0 }
  0x62   :  { %826 = vxpose.xlu0.c.b16.end [3/3] (short) %v2359_v27, 128 }
  0x67   :  { %2167 = vmatmul.mubr.bf16.gmra.mrb[8].mxu0 %v2343_v9 }
  0x68   :  { %2170 = vmatprep.mubr.msk.bf16.mxu0 %vm2480_vm0, %v2479_v0 }
  0x6f   :  { %2171 = vmatmul.mubr.bf16.gmra.mrb[12].mxu0 %v2344_v12 }
  0x70   :  { %2174 = vmatprep.mubr.msk.bf16.mxu0 %vm2480_vm0, %v2479_v0 }
  0x77   :  { %2175 = vmatmul.mubr.bf16.gmra.mrb[16].mxu0 %v2345_v14 }
  0x78   :  { %2178 = vmatprep.mubr.msk.bf16.mxu0 %vm2480_vm0, %v2479_v0 }
  0x7f   :  { %2179 = vmatmul.mubr.bf16.gmra.mrb[20].mxu0 %v2346_v18 }
  0x80   :  { %2182 = vmatprep.mubr.msk.bf16.mxu0 %vm2480_vm0, %v2479_v0 }
  0x87   :  { %2183 = vmatmul.mubr.bf16.gmra.mrb[24].mxu0 %v2347_v20 }
  0x88   :  { %2186 = vmatprep.mubr.msk.bf16.mxu0 %vm2480_vm0, %v2479_v0 }
  0x8f   :  { %2187 = vmatmul.mubr.bf16.gmra.mrb[28].mxu0 %v2348_v22 }
  0x90   :  { %2190 = vmatprep.mubr.msk.bf16.mxu0 %vm2480_vm0, %v2479_v0 }
  0x97   :  { %2191 = vmatmul.mubr.bf16.gmra.mrb[32].mxu0 %v2349_v8  ;;  %v1926_v8 = vunpack.c.h.bf16 %v1993_v5 }
  0x98   :  { %2194 = vmatprep.mubr.msk.bf16.mxu0 %vm2480_vm0, %v2479_v0 }
  0x9f   :  { %2195 = vmatmul.mubr.bf16.gmra.mrb[36].mxu0 %v2350_v11 }
  0xa0   :  { %2198 = vmatprep.mubr.msk.bf16.mxu0 %vm2480_vm0, %v2479_v0  ;;  %v816_v33 = vpop.trf.xlu0 }
  0xa1   :  { %897 = vmatprep.mubr.bf16.mxu1 %v816_v33 }
  0xa7   :  { %2199 = vmatmul.mubr.bf16.gmra.mrb[40].mxu0 %v2351_v15  ;;  %v1994_v15 = vld [vmem:[#allocation6 + $0x28] sm:$0xff]  }
  0xa8   :  { %2202 = vmatprep.mubr.msk.bf16.mxu0 %vm2480_vm0, %v2479_v0  ;;  %v1930_v18 = vunpack.c.h.bf16 %v1994_v15 }
  0xaf   :  { %2203 = vmatmul.mubr.bf16.gmra.mrb[44].mxu0 %v2352_v17  ;;  %v1929_v17 = vunpack.c.l.bf16 %v1994_v15 }
  0xb0   :  { %2206 = vmatprep.mubr.msk.bf16.mxu0 %vm2480_vm0, %v2479_v0 }
  0xb7   :  { %2207 = vmatmul.mubr.bf16.gmra.mrb[48].mxu0 %v2353_v19 }
  0xb8   :  { %2210 = vmatprep.mubr.msk.bf16.mxu0 %vm2480_vm0, %v2479_v0 }
  0xbf   :  { %2211 = vmatmul.mubr.bf16.gmra.mrb[52].mxu0 %v2354_v21 }
  0xc0   :  { %2214 = vmatprep.mubr.msk.bf16.mxu0 %vm2480_vm0, %v2479_v0 }
  0xc7   :  { %2215 = vmatmul.mubr.bf16.gmra.mrb[56].mxu0 %v2355_v23 }
  0xc8   :  { %2218 = vmatprep.mubr.msk.bf16.mxu0 %vm2480_vm0, %v2479_v0 }
  0xcf   :  { %2219 = vmatmul.mubr.bf16.gmra.mrb[60].mxu0 %v2356_v24 }
  0xd0   :  { %2222 = vmatprep.mubr.msk.bf16.mxu0 %vm2480_vm0, %v2479_v0 }
  0xd7   :  { %2223 = vmatmul.mubr.bf16.gmra.mrb[64].mxu0 %v2357_v25  ;;  %v1995_v25 = vld [vmem:[#allocation6 + $0x30] sm:$0xff]  }
  0xd8   :  { %2226 = vmatprep.mubr.msk.bf16.mxu0 %vm2480_vm0, %v2479_v0  ;;  %v1934_v28 = vunpack.c.h.bf16 %v1995_v25 }
  0xdf   :  { %2227 = vmatmul.mubr.bf16.gmra.mrb[68].mxu0 %v2358_v26 }
  0xe0   :  { %2230 = vmatprep.mubr.msk.bf16.mxu0 %vm2480_vm0, %v2479_v0 }
  0xe7   :  { %2231 = vmatmul.mubr.bf16.gmra.mrb[72].mxu0 %v2359_v27  ;;  %v1933_v27 = vunpack.c.l.bf16 %v1995_v25 }
 0x12a   :  { %v492_v31 = vpop.f32.mrb[0].mxu0 }
 0x12b   :  { %v2160_v32 = vpop.f32.mrb[1].mxu0  ;;  %v2662_v35 = vadd.f32 %v1909_v29, %v492_v31 }
 0x12c   :  { %v495_v34 = vpop.f32.mrb[2].mxu0 }
 0x12d   :  { %v2664_v36 = vadd.f32 %v1910_v30, %v495_v34  ;;  %v2161_v37 = vpop.f32.mrb[3].mxu0 }
 0x12e   :  { %v1996_v37 = vld [vmem:[#allocation6 + $0x38] sm:$0xff]  }
 0x12f   :  { %v757_v39 = vpack.c.bf16 %v2664_v36, %v2662_v35  ;;  %v82_v35 = vld [vmem:[%s3071_s0] sm:$0xff] }
 0x132   :  { %v500_v42 = vpop.f32.mrb[4].mxu0 }
 0x133   :  { %v2164_v43 = vpop.f32.mrb[5].mxu0  ;;  %v2668_v45 = vadd.f32 %v1913_v40, %v500_v42  ;;  %v1937_v40 = vunpack.c.l.bf16 %v1996_v37 }
 0x134   :  { %v503_v44 = vpop.f32.mrb[6].mxu0 }
 0x135   :  { %v2670_v46 = vadd.f32 %v1914_v41, %v503_v44  ;;  %v2165_v47 = vpop.f32.mrb[7].mxu0  ;;  %v1938_v41 = vunpack.c.h.bf16 %v1996_v37 }
 0x137   :  { %v758_v49 = vpack.c.bf16 %v2670_v46, %v2668_v45  ;;  %v83_v45 = vld [vmem:[%s3071_s0 + $0x8] sm:$0xff] }
 0x13a   :  { %v508_v52 = vpop.f32.mrb[8].mxu0 }
 0x13b   :  { %v2168_v53 = vpop.f32.mrb[9].mxu0  ;;  %v2674_v55 = vadd.f32 %v1917_v50, %v508_v52 }
 0x13c   :  { %v511_v54 = vpop.f32.mrb[10].mxu0 }
 0x13d   :  { %v2676_v56 = vadd.f32 %v1918_v51, %v511_v54  ;;  %v2169_v57 = vpop.f32.mrb[11].mxu0  ;;  %v1997_v51 = vld [vmem:[#allocation6 + $0x40] sm:$0xff]  }
 0x13e   :  { %v1941_v53 = vunpack.c.l.bf16 %v1997_v51  ;;  %v1942_v54 = vunpack.c.h.bf16 %v1997_v51 }
 0x13f   :  { %v759_v59 = vpack.c.bf16 %v2676_v56, %v2674_v55  ;;  %v85_v55 = vld [vmem:[%s3071_s0 + $0x18] sm:$0xff] }
 0x142   :  { %v516_v62 = vpop.f32.mrb[12].mxu0 }
 0x143   :  { %v2172_v63 = vpop.f32.mrb[13].mxu0  ;;  %v2680_v2 = vadd.f32 %v1921_v60, %v516_v62 }
 0x144   :  { %v519_v1 = vpop.f32.mrb[14].mxu0 }
 0x145   :  { %v2682_v3 = vadd.f32 %v1922_v61, %v519_v1  ;;  %v2173_v4 = vpop.f32.mrb[15].mxu0  ;;  %v1998_v1 = vld [vmem:[#allocation6 + $0x48] sm:$0xff]  }
 0x146   :  { %v1945_v5 = vunpack.c.l.bf16 %v1998_v1 }
 0x147   :  { %v760_v6 = vpack.c.bf16 %v2682_v3, %v2680_v2  ;;  %v88_v2 = vld [vmem:[%s3071_s0 + $0x30] sm:$0xff] }
 0x14a   :  { %v524_v9 = vpop.f32.mrb[16].mxu0 }
 0x14b   :  { %v2176_v10 = vpop.f32.mrb[17].mxu0  ;;  %v2686_v12 = vadd.f32 %v1925_v7, %v524_v9  ;;  %v1946_v7 = vunpack.c.h.bf16 %v1998_v1  ;;  %v2002_v1 = vld [vmem:[#allocation6 + $0x68] sm:$0xff]  }
 0x14c   :  { %v527_v11 = vpop.f32.mrb[18].mxu0 }
 0x14d   :  { %v2688_v13 = vadd.f32 %v1926_v8, %v527_v11  ;;  %v2177_v14 = vpop.f32.mrb[19].mxu0 }
 0x14f   :  { %v761_v16 = vpack.c.bf16 %v2688_v13, %v2686_v12 }
 0x152   :  { %v532_v19 = vpop.f32.mrb[20].mxu0 }
 0x153   :  { %v2180_v20 = vpop.f32.mrb[21].mxu0  ;;  %v2692_v22 = vadd.f32 %v1929_v17, %v532_v19  ;;  %v1999_v17 = vld [vmem:[#allocation6 + $0x50] sm:$0xff]  }
 0x154   :  { %v535_v21 = vpop.f32.mrb[22].mxu0  ;;  %v1949_v19 = vunpack.c.l.bf16 %v1999_v17  ;;  %v1950_v20 = vunpack.c.h.bf16 %v1999_v17  ;;  %v2003_v17 = vld [vmem:[#allocation6 + $0x70] sm:$0xff]  }
 0x155   :  { %v2694_v23 = vadd.f32 %v1930_v18, %v535_v21  ;;  %v2181_v24 = vpop.f32.mrb[23].mxu0  ;;  %v1965_v12 = vunpack.c.l.bf16 %v2003_v17  ;;  %v1966_v13 = vunpack.c.h.bf16 %v2003_v17 }
 0x157   :  { %v762_v26 = vpack.c.bf16 %v2694_v23, %v2692_v22 }
 0x15a   :  { %v540_v29 = vpop.f32.mrb[24].mxu0 }
 0x15b   :  { %v2184_v30 = vpop.f32.mrb[25].mxu0  ;;  %v2698_v32 = vadd.f32 %v1933_v27, %v540_v29  ;;  %v2481_v27 = vmov 0   ;;  %v2000_v29 = vld [vmem:[#allocation6 + $0x58] sm:$0xff]  }
 0x15c   :  { %v543_v31 = vpop.f32.mrb[26].mxu0  ;;  %2331 = vset.pattern.permute.xlu1 %v2481_v27  ;;  %2332 = vset.pattern.permute.xlu0 %v2481_v27  ;;  %v1953_v46 = vunpack.c.l.bf16 %v2000_v29 }
 0x15d   :  { %v2700_v33 = vadd.f32 %v1934_v28, %v543_v31  ;;  %v2185_v34 = vpop.f32.mrb[27].mxu0  ;;  %132 = vperm.xlu1 %2331, %v82_v35   ;;  %147 = vperm.xlu0 %2332, %v85_v55   ;;  %v2006_v55 = vld [vmem:[#allocation6 + $0x88] sm:$0xff]  }
 0x15f   :  { %v763_v38 = vpack.c.bf16 %v2700_v33, %v2698_v32 }
 0x161   :  { %137 = vperm.xlu1 %2331, %v83_v45  }
 0x162   :  { %v548_v42 = vpop.f32.mrb[28].mxu0 }
 0x163   :  { %v2188_v43 = vpop.f32.mrb[29].mxu0  ;;  %v2704_v47 = vadd.f32 %v1937_v40, %v548_v42  ;;  %v84_v40 = vld [vmem:[%s3071_s0 + $0x10] sm:$0xff] }
 0x164   :  { %v551_v44 = vpop.f32.mrb[30].mxu0 }
 0x165   :  { %v2706_v48 = vadd.f32 %v1938_v41, %v551_v44  ;;  %v2189_v50 = vpop.f32.mrb[31].mxu0  ;;  %142 = vperm.xlu1 %2331, %v84_v40   ;;  %v2001_v44 = vld [vmem:[#allocation6 + $0x60] sm:$0xff]  }
 0x166   :  { %v86_v50 = vld [vmem:[%s3071_s0 + $0x20] sm:$0xff]  ;;  %v1957_v56 = vunpack.c.l.bf16 %v2001_v44 }
 0x167   :  { %v764_v52 = vpack.c.bf16 %v2706_v48, %v2704_v47  ;;  %v1978_v47 = vunpack.c.h.bf16 %v2006_v55 }
 0x169   :  { %152 = vperm.xlu1 %2331, %v86_v50   ;;  %v817_v50 = vpop.trf.xlu0 }
 0x16a   :  { %v556_v57 = vpop.f32.mrb[32].mxu0 }
 0x16b   :  { %v2192_v58 = vpop.f32.mrb[33].mxu0  ;;  %v735_v61 = vadd.f32 %v1941_v53, %v556_v57 }
 0x16c   :  { %v559_v60 = vpop.f32.mrb[34].mxu0  ;;  %v94_v58 = vld [vmem:[%s3071_s0 + $0x60] sm:$0xff] }
 0x16d   :  { %v736_v62 = vadd.f32 %v1942_v54, %v559_v60  ;;  %v2193_v63 = vpop.f32.mrb[35].mxu0  ;;  %v87_v54 = vld [vmem:[%s3071_s0 + $0x28] sm:$0xff]  ;;  %192 = vperm.xlu0 %2332, %v94_v58  }
 0x16e   :  { %157 = vperm.xlu1 %2331, %v87_v54   ;;  %v1977_v54 = vunpack.c.l.bf16 %v2006_v55 }
 0x16f   :  { %v765_v4 = vpack.c.bf16 %v736_v62, %v735_v61 }
 0x171   :  { %2035 = vmatprep.subr.bf16.mxu1 %v765_v4  ;;  %v1961_v4 = vunpack.c.l.bf16 %v2002_v1 }
 0x172   :  { %v564_v8 = vpop.f32.mrb[36].mxu0  ;;  %2036 = vmatpush3.bf16.msra.mxu1 %v757_v39  ;;  %162 = vperm.xlu1 %2331, %v88_v2  }
 0x173   :  { %v2196_v9 = vpop.f32.mrb[37].mxu0  ;;  %v737_v11 = vadd.f32 %v1945_v5, %v564_v8  ;;  %v1962_v5 = vunpack.c.h.bf16 %v2002_v1  ;;  %v89_v8 = vld [vmem:[%s3071_s0 + $0x38] sm:$0xff] }
 0x174   :  { %v567_v10 = vpop.f32.mrb[38].mxu0 }
 0x175   :  { %v738_v14 = vadd.f32 %v1946_v7, %v567_v10  ;;  %v2197_v15 = vpop.f32.mrb[39].mxu0 }
 0x176   :  { %167 = vperm.xlu1 %2331, %v89_v8  }
 0x177   :  { %v766_v18 = vpack.c.bf16 %v738_v14, %v737_v11 }
 0x179   :  { %2037 = vmatprep.subr.bf16.mxu1 %v766_v18  ;;  %v90_v18 = vld [vmem:[%s3071_s0 + $0x40] sm:$0xff] }
 0x17a   :  { %v572_v21 = vpop.f32.mrb[40].mxu0  ;;  %2038 = vmatpush3.bf16.msra.mxu1 %v758_v49  ;;  %v1954_v49 = vunpack.c.h.bf16 %v2000_v29  ;;  %172 = vperm.xlu1 %2331, %v90_v18  }
 0x17b   :  { %v2200_v24 = vpop.f32.mrb[41].mxu0  ;;  %v739_v36 = vadd.f32 %v1949_v19, %v572_v21 }
 0x17c   :  { %v575_v25 = vpop.f32.mrb[42].mxu0 }
 0x17d   :  { %v740_v39 = vadd.f32 %v1950_v20, %v575_v25  ;;  %v2201_v28 = vpop.f32.mrb[43].mxu0  ;;  %v91_v20 = vld [vmem:[%s3071_s0 + $0x48] sm:$0xff] }
 0x17e   :  { %177 = vperm.xlu1 %2331, %v91_v20  }
 0x17f   :  { %v767_v30 = vpack.c.bf16 %v740_v39, %v739_v36  ;;  %v2004_v36 = vld [vmem:[#allocation6 + $0x78] sm:$0xff]  }
 0x180   :  { %v92_v39 = vld [vmem:[%s3071_s0 + $0x50] sm:$0xff]  ;;  %v1969_v29 = vunpack.c.l.bf16 %v2004_v36  ;;  %v1970_v22 = vunpack.c.h.bf16 %v2004_v36 }
 0x181   :  { %2039 = vmatprep.subr.bf16.mxu1 %v767_v30 }
 0x182   :  { %v580_v31 = vpop.f32.mrb[44].mxu0  ;;  %2040 = vmatpush3.bf16.msra.mxu1 %v759_v59  ;;  %v1958_v59 = vunpack.c.h.bf16 %v2001_v44  ;;  %182 = vperm.xlu1 %2331, %v92_v39  }
 0x183   :  { %v2204_v34 = vpop.f32.mrb[45].mxu0  ;;  %v741_v41 = vadd.f32 %v1953_v46, %v580_v31  ;;  %v2005_v46 = vld [vmem:[#allocation6 + $0x80] sm:$0xff]  }
 0x184   :  { %v583_v37 = vpop.f32.mrb[46].mxu0  ;;  %v1974_v32 = vunpack.c.h.bf16 %v2005_v46 }
 0x185   :  { %v742_v42 = vadd.f32 %v1954_v49, %v583_v37  ;;  %v2205_v43 = vpop.f32.mrb[47].mxu0  ;;  %v95_v37 = vld [vmem:[%s3071_s0 + $0x68] sm:$0xff] }
 0x187   :  { %v768_v51 = vpack.c.bf16 %v742_v42, %v741_v41  ;;  %v1973_v41 = vunpack.c.l.bf16 %v2005_v46  ;;  %v97_v42 = vld [vmem:[%s3071_s0 + $0x78] sm:$0xff]  ;;  %v2364_v46 = vld [vmem:[%s3075_s4 + $0x20] sm:$0xff]  }
 0x189   :  { %2041 = vmatprep.subr.bf16.mxu1 %v768_v51 }
 0x18a   :  { %v588_v53 = vpop.f32.mrb[48].mxu0  ;;  %2042 = vmatpush3.bf16.msra.mxu1 %v760_v6  ;;  %v96_v6 = vld [vmem:[%s3071_s0 + $0x70] sm:$0xff] }
 0x18b   :  { %v2208_v57 = vpop.f32.mrb[49].mxu0  ;;  %v743_v61 = vadd.f32 %v1957_v56, %v588_v53  ;;  %202 = vperm.xlu0 %2332, %v96_v6  }
 0x18c   :  { %v591_v60 = vpop.f32.mrb[50].mxu0  ;;  %v818_v57 = vpop.trf.xlu0 }
 0x18d   :  { %v744_v62 = vadd.f32 %v1958_v59, %v591_v60  ;;  %v2209_v63 = vpop.f32.mrb[51].mxu0 }
 0x18f   :  { %v769_v3 = vpack.c.bf16 %v744_v62, %v743_v61  ;;  %v2007_v62 = vld [vmem:[#allocation6 + $0x90] sm:$0xff]  }
 0x190   :  { %v1982_v6 = vunpack.c.h.bf16 %v2007_v62 }
 0x191   :  { %2043 = vmatprep.subr.bf16.mxu1 %v769_v3  ;;  %v1981_v3 = vunpack.c.l.bf16 %v2007_v62 }
 0x192   :  { %v596_v7 = vpop.f32.mrb[52].mxu0  ;;  %2044 = vmatpush3.bf16.msra.mxu1 %v761_v16 }
 0x193   :  { %v2212_v9 = vpop.f32.mrb[53].mxu0  ;;  %v745_v11 = vadd.f32 %v1961_v4, %v596_v7  ;;  %v819_v7 = vpop.trf.xlu0 }
 0x194   :  { %v599_v10 = vpop.f32.mrb[54].mxu0 }
 0x195   :  { %v746_v14 = vadd.f32 %v1962_v5, %v599_v10  ;;  %v2213_v15 = vpop.f32.mrb[55].mxu0 }
 0x197   :  { %v770_v19 = vpack.c.bf16 %v746_v14, %v745_v11  ;;  %v820_v18 = vpop.trf.xlu0 }
 0x199   :  { %2045 = vmatprep.subr.bf16.mxu1 %v770_v19 }
 0x19a   :  { %v604_v16 = vpop.f32.mrb[56].mxu0  ;;  %2046 = vmatpush3.bf16.msra.mxu1 %v762_v26  ;;  %v93_v26 = vld [vmem:[%s3071_s0 + $0x58] sm:$0xff] }
 0x19b   :  { %v2216_v21 = vpop.f32.mrb[57].mxu0  ;;  %v747_v25 = vadd.f32 %v1965_v12, %v604_v16  ;;  %187 = vperm.xlu1 %2331, %v93_v26   ;;  %v821_v19 = vpop.trf.xlu0  ;;  %v2361_v26 = vld [vmem:[%s3075_s4 + $0x8] sm:$0xff]  }
 0x19c   :  { %v607_v24 = vpop.f32.mrb[58].mxu0 }
 0x19d   :  { %v748_v27 = vadd.f32 %v1966_v13, %v607_v24  ;;  %v2217_v35 = vpop.f32.mrb[59].mxu0 }
 0x19f   :  { %v771_v28 = vpack.c.bf16 %v748_v27, %v747_v25  ;;  %197 = vperm.xlu1 %2331, %v95_v37   ;;  %v822_v13 = vpop.trf.xlu0 }
 0x1a1   :  { %2047 = vmatprep.subr.bf16.mxu1 %v771_v28 }
 0x1a2   :  { %v612_v23 = vpop.f32.mrb[60].mxu0  ;;  %2048 = vmatpush3.bf16.msra.mxu1 %v763_v38  ;;  %v800_v38 = vpop.trf.xlu1 }
 0x1a3   :  { %v2220_v30 = vpop.f32.mrb[61].mxu0  ;;  %v749_v49 = vadd.f32 %v1969_v29, %v612_v23  ;;  %207 = vperm.xlu1 %2331, %v97_v42   ;;  %v823_v16 = vpop.trf.xlu0  ;;  %v2360_v23 = vld [vmem:[%s3075_s4] sm:$0xff]  }
 0x1a4   :  { %v615_v45 = vpop.f32.mrb[62].mxu0  ;;  %v2362_v30 = vld [vmem:[%s3075_s4 + $0x10] sm:$0xff]  }
 0x1a5   :  { %v750_v31 = vadd.f32 %v1970_v22, %v615_v45  ;;  %v2221_v34 = vpop.f32.mrb[63].mxu0  ;;  %v2363_v45 = vld [vmem:[%s3075_s4 + $0x18] sm:$0xff]  }
 0x1a6   :  { %v801_v48 = vpop.trf.xlu1  ;;  %v2367_v34 = vld [vmem:[%s3075_s4 + $0x38] sm:$0xff]  }
 0x1a7   :  { %v772_v40 = vpack.c.bf16 %v750_v31, %v749_v49  ;;  %v832_v21 = vpop.trf.xlu0  ;;  %v2365_v49 = vld [vmem:[%s3075_s4 + $0x28] sm:$0xff]   ;;  %v2366_v31 = vld [vmem:[%s3075_s4 + $0x30] sm:$0xff]  }
 0x1a9   :  { %2049 = vmatprep.subr.bf16.mxu1 %v772_v40 }
 0x1aa   :  { %v620_v33 = vpop.f32.mrb[64].mxu0  ;;  %2050 = vmatpush3.bf16.msra.mxu1 %v764_v52  ;;  %v802_v4 = vpop.trf.xlu1 }
 0x1ab   :  { %v751_v43 = vadd.f32 %v1973_v41, %v620_v33  ;;  %v2224_v44 = vpop.f32.mrb[65].mxu0  ;;  %v833_v25 = vpop.trf.xlu0 }
 0x1ac   :  { %v623_v51 = vpop.f32.mrb[66].mxu0 }
 0x1ad   :  { %v752_v56 = vadd.f32 %v1974_v32, %v623_v51  ;;  %v2225_v59 = vpop.f32.mrb[67].mxu0  ;;  %898 = vmatmul.mubr.bf16.vlgmr.msra.gmra.mrb[0].mxu1 %v800_v38 }
 0x1ae   :  { %905 = vmatprep.mubr.bf16.mxu1 %v817_v50  ;;  %v803_v17 = vpop.trf.xlu1 }
 0x1af   :  { %v773_v53 = vpack.c.bf16 %v752_v56, %v751_v43  ;;  %v834_v35 = vpop.trf.xlu0 }
 0x1b1   :  { %2234 = vmatprep.subr.bf16.mxu1 %v773_v53 }
 0x1b2   :  { %2235 = vmatpush3.bf16.msra.mxu1 %v773_v53  ;;  %v628_v52 = vpop.f32.mrb[68].mxu0  ;;  %v804_v12 = vpop.trf.xlu1 }
 0x1b3   :  { %v753_v58 = vadd.f32 %v1977_v54, %v628_v52  ;;  %v2228_v60 = vpop.f32.mrb[69].mxu0  ;;  %v835_v36 = vpop.trf.xlu0 }
 0x1b4   :  { %v631_v61 = vpop.f32.mrb[70].mxu0 }
 0x1b5   :  { %906 = vmatmul.mubr.bf16.gmra.mrb[4].mxu1 %v801_v48  ;;  %v754_v63 = vadd.f32 %v1978_v47, %v631_v61  ;;  %v2229_v1 = vpop.f32.mrb[71].mxu0 }
 0x1b6   :  { %913 = vmatprep.mubr.bf16.mxu1 %v818_v57  ;;  %v805_v20 = vpop.trf.xlu1 }
 0x1b7   :  { %v774_v2 = vpack.c.bf16 %v754_v63, %v753_v58  ;;  %v836_v39 = vpop.trf.xlu0 }
 0x1b9   :  { %2236 = vmatprep.subr.bf16.mxu1 %v774_v2 }
 0x1ba   :  { %2237 = vmatpush3.bf16.msra.mxu1 %v774_v2  ;;  %v636_v5 = vpop.f32.mrb[72].mxu0  ;;  %v806_v24 = vpop.trf.xlu1 }
 0x1bb   :  { %v755_v8 = vadd.f32 %v1981_v3, %v636_v5  ;;  %v2232_v9 = vpop.f32.mrb[73].mxu0  ;;  %v837_v28 = vpop.trf.xlu0 }
 0x1bc   :  { %v639_v10 = vpop.f32.mrb[74].mxu0 }
 0x1bd   :  { %914 = vmatmul.mubr.bf16.gmra.mrb[8].mxu1 %v802_v4  ;;  %v756_v11 = vadd.f32 %v1982_v6, %v639_v10  ;;  %v2233_v14 = vpop.f32.mrb[75].mxu0 }
 0x1be   :  { %921 = vmatprep.mubr.bf16.mxu1 %v819_v7  ;;  %v807_v27 = vpop.trf.xlu1 }
 0x1bf   :  { %v775_v15 = vpack.c.bf16 %v756_v11, %v755_v8  ;;  %v838_v29 = vpop.trf.xlu0 }
 0x1c1   :  { %2238 = vmatprep.subr.bf16.mxu1 %v775_v15 }
 0x1c2   :  { %2239 = vmatpush3.bf16.msra.mxu1 %v775_v15 }
 0x1c3   :  { %v839_v22 = vpop.trf.xlu0  ;;  %2256 = vmatprep.subr.bf16.mxu1 %v2360_v23 }
 0x1c5   :  { %922 = vmatmul.mubr.bf16.gmra.mrb[12].mxu1 %v803_v17 }
 0x1c6   :  { %929 = vmatprep.mubr.bf16.mxu1 %v820_v18 }
 0x1cd   :  { %930 = vmatmul.mubr.bf16.gmra.mrb[16].mxu1 %v804_v12 }
 0x1ce   :  { %937 = vmatprep.mubr.bf16.mxu1 %v821_v19 }
 0x1d5   :  { %938 = vmatmul.mubr.bf16.gmra.mrb[20].mxu1 %v805_v20 }
 0x1d6   :  { %945 = vmatprep.mubr.bf16.mxu1 %v822_v13 }
 0x1dc   :  { %v133_v56 = vpop.permute.xlu1 %132 }
 0x1dd   :  { %946 = vmatmul.mubr.bf16.gmra.mrb[24].mxu1 %v806_v24 }
 0x1de   :  { %953 = vmatprep.mubr.bf16.mxu1 %v823_v16 }
 0x1e0   :  { %v138_v57 = vpop.permute.xlu1 %137 }
 0x1e4   :  { %v143_v63 = vpop.permute.xlu1 %142 }
 0x1e5   :  { %954 = vmatmul.mubr.bf16.gmra.mrb[28].mxu1 %v807_v27 }
 0x1e6   :  { %2240 = vmatprep.mubr.msk.bf16.mxu1 %vm840_vm1, %v832_v21 }
 0x1e8   :  { %v2818_v6 = vpop.permute.xlu1 %152 }
 0x1ed   :  { %2241 = vmatmul.mubr.msk.bf16.vlgmr.msra.gmra.mrb[32].mxu1 %vm840_vm1, %v833_v25  ;;  %v2824_v10 = vpop.permute.xlu1 %157 }
 0x1ee   :  { %2244 = vmatprep.mubr.msk.bf16.mxu1 %vm840_vm1, %v834_v35  ;;  %2257 = vmatpush3.bf16.msra.mxu1 %v2360_v23  ;;  %v1983_v23 = vld [vmem:[%s3072_s1 + $0x8] sm:$0xff]  }
 0x1ef   :  { %2258 = vmatprep.subr.bf16.mxu1 %v2361_v26 }
 0x1f1   :  { %v163_v12 = vpop.permute.xlu1 %162 }
 0x1f2   :  { %2259 = vmatpush3.bf16.msra.mxu1 %v2361_v26 }
 0x1f3   :  { %2260 = vmatprep.subr.bf16.mxu1 %v2362_v30 }
 0x1f5   :  { %2245 = vmatmul.mubr.msk.bf16.gmra.mrb[36].mxu1 %vm840_vm1, %v835_v36  ;;  %v168_v24 = vpop.permute.xlu1 %167 }
 0x1f6   :  { %2248 = vmatprep.mubr.msk.bf16.mxu1 %vm840_vm1, %v836_v39  ;;  %2261 = vmatpush3.bf16.msra.mxu1 %v2362_v30  ;;  %v1876_v30 = vld [vmem:[%s3072_s1] sm:$0xff]  }
 0x1f7   :  { %2262 = vmatprep.subr.bf16.mxu1 %v2363_v45 }
 0x1f9   :  { %v2834_v36 = vpop.permute.xlu1 %172 }
 0x1fa   :  { %2263 = vmatpush3.bf16.msra.mxu1 %v2363_v45  ;;  %v1882_v45 = vunpack.c.h.bf16 %v1983_v23 }
 0x1fb   :  { %2264 = vmatprep.subr.bf16.mxu1 %v2364_v46 }
 0x1fd   :  { %2249 = vmatmul.mubr.msk.bf16.gmra.mrb[40].mxu1 %vm840_vm1, %v837_v28 }
 0x1fe   :  { %2252 = vmatprep.mubr.msk.bf16.mxu1 %vm840_vm1, %v838_v29  ;;  %2265 = vmatpush3.bf16.msra.mxu1 %v2364_v46  ;;  %v1881_v46 = vunpack.c.l.bf16 %v1983_v23 }
 0x1ff   :  { %2266 = vmatprep.subr.bf16.mxu1 %v2365_v49 }
 0x202   :  { %2267 = vmatpush3.bf16.msra.mxu1 %v2365_v49  ;;  %v2846_v49 = vpop.permute.xlu1 %177 }
 0x203   :  { %2268 = vmatprep.subr.bf16.mxu1 %v2366_v31 }
 0x205   :  { %2253 = vmatmul.mubr.msk.bf16.gmra.mrb[44].mxu1 %vm840_vm1, %v839_v22 }
 0x206   :  { %2269 = vmatpush3.bf16.msra.mxu1 %v2366_v31  ;;  %v1877_v31 = vunpack.c.l.bf16 %v1876_v30 }
 0x207   :  { %2270 = vmatprep.subr.bf16.mxu1 %v2367_v34 }
 0x20a   :  { %2271 = vmatpush3.bf16.msra.mxu1 %v2367_v34  ;;  %v1878_v34 = vunpack.c.h.bf16 %v1876_v30 }
 0x280   :  { %v2051_v37 = vpop.f32.mrb[0].mxu1 }
 0x281   :  { %v2052_v40 = vpop.f32.mrb[1].mxu1 }
 0x282   :  { %v2806_v41 = vadd.f32 %v2052_v40, %v2051_v37  ;;  %v2054_v32 = vpop.f32.mrb[2].mxu1  ;;  %v148_v40 = vpop.permute.xlu0 %147 }
 0x283   :  { %v2055_v33 = vpop.f32.mrb[3].mxu1 }
 0x284   :  { %v2808_v38 = vadd.f32 %v2055_v33, %v2054_v32 }
 0x288   :  { %v2057_v42 = vpop.f32.mrb[4].mxu1 }
 0x289   :  { %v2058_v43 = vpop.f32.mrb[5].mxu1 }
 0x28a   :  { %v2059_v44 = vadd.f32 %v2058_v43, %v2057_v42  ;;  %v2060_v50 = vpop.f32.mrb[6].mxu1  ;;  %v213_v42 = vmul.f32 %v1882_v45, %v148_v40 }
 0x28b   :  { %v2061_v51 = vpop.f32.mrb[7].mxu1 }
 0x28c   :  { %v2062_v55 = vadd.f32 %v2061_v51, %v2060_v50  ;;  %v212_v51 = vmul.f32 %v1881_v46, %v143_v63 }
 0x290   :  { %v2063_v59 = vpop.f32.mrb[8].mxu1 }
 0x291   :  { %v2064_v53 = vpop.f32.mrb[9].mxu1 }
 0x292   :  { %v2810_v54 = vadd.f32 %v2064_v53, %v2063_v59  ;;  %v2066_v47 = vpop.f32.mrb[10].mxu1 }
 0x293   :  { %v2067_v48 = vpop.f32.mrb[11].mxu1 }
 0x294   :  { %v2812_v52 = vadd.f32 %v2067_v48, %v2066_v47  ;;  %v210_v47 = vmul.f32 %v1877_v31, %v133_v56  ;;  %v211_v48 = vmul.f32 %v1878_v34, %v138_v57 }
 0x298   :  { %v2069_v58 = vpop.f32.mrb[12].mxu1 }
 0x299   :  { %v2070_v60 = vpop.f32.mrb[13].mxu1 }
 0x29a   :  { %v2814_v61 = vadd.f32 %v2070_v60, %v2069_v58  ;;  %v2072_v62 = vpop.f32.mrb[14].mxu1  ;;  %v1985_v58 = vld [vmem:[%s3072_s1 + $0x18] sm:$0xff]  }
 0x29b   :  { %v2073_v1 = vpop.f32.mrb[15].mxu1  ;;  %v1889_v63 = vunpack.c.l.bf16 %v1985_v58 }
 0x29c   :  { %v2816_v2 = vadd.f32 %v2073_v1, %v2072_v62  ;;  %v183_v62 = vpop.permute.xlu1 %182 }
 0x2a0   :  { %v2075_v3 = vpop.f32.mrb[16].mxu1 }
 0x2a1   :  { %v2076_v4 = vpop.f32.mrb[17].mxu1 }
 0x2a2   :  { %v2820_v5 = vadd.f32 %v2076_v4, %v2075_v3  ;;  %v2078_v7 = vpop.f32.mrb[18].mxu1 }
 0x2a3   :  { %v2079_v8 = vpop.f32.mrb[19].mxu1 }
 0x2a4   :  { %v2822_v9 = vadd.f32 %v2079_v8, %v2078_v7 }
 0x2a8   :  { %v2081_v11 = vpop.f32.mrb[20].mxu1 }
 0x2a9   :  { %v2082_v14 = vpop.f32.mrb[21].mxu1 }
 0x2aa   :  { %v2826_v15 = vadd.f32 %v2082_v14, %v2081_v11  ;;  %v2084_v17 = vpop.f32.mrb[22].mxu1 }
 0x2ab   :  { %v2085_v18 = vpop.f32.mrb[23].mxu1 }
 0x2ac   :  { %v2828_v19 = vadd.f32 %v2085_v18, %v2084_v17 }
 0x2b0   :  { %v2087_v13 = vpop.f32.mrb[24].mxu1 }
 0x2b1   :  { %v2088_v16 = vpop.f32.mrb[25].mxu1 }
 0x2b2   :  { %v2830_v20 = vadd.f32 %v2088_v16, %v2087_v13  ;;  %v2090_v21 = vpop.f32.mrb[26].mxu1  ;;  %v216_v13 = vmul.f32 %v1889_v63, %v163_v12 }
 0x2b3   :  { %v2091_v25 = vpop.f32.mrb[27].mxu1 }
 0x2b4   :  { %v2832_v27 = vadd.f32 %v2091_v25, %v2090_v21  ;;  %v188_v21 = vpop.permute.xlu1 %187 }
 0x2b8   :  { %v2093_v35 = vpop.f32.mrb[28].mxu1 }
 0x2b9   :  { %v2094_v39 = vpop.f32.mrb[29].mxu1 }
 0x2ba   :  { %v2836_v28 = vadd.f32 %v2094_v39, %v2093_v35  ;;  %v2096_v29 = vpop.f32.mrb[30].mxu1 }
 0x2bb   :  { %v2097_v22 = vpop.f32.mrb[31].mxu1 }
 0x2bc   :  { %v2841_v26 = vadd.f32 %v2097_v22, %v2096_v29 }
 0x2c0   :  { %v2242_v37 = vpop.f32.mrb[32].mxu1 }
 0x2c1   :  { %v1005_v32 = vadd.f32 %v2242_v37, %v2059_v44  ;;  %v996_v33 = vpop.f32.mrb[33].mxu1  ;;  %v1984_v44 = vld [vmem:[%s3072_s1 + $0x10] sm:$0xff]   ;;  %v198_v37 = vpop.permute.xlu1 %197 }
 0x2c2   :  { %v997_v43 = vadd.f32 %v2806_v41, %v996_v33  ;;  %v2243_v50 = vpop.f32.mrb[34].mxu1  ;;  %v1885_v56 = vunpack.c.l.bf16 %v1984_v44  ;;  %v1886_v57 = vunpack.c.h.bf16 %v1984_v44 }
 0x2c3   :  { %v1008_v59 = vadd.f32 %v2243_v50, %v2062_v55  ;;  %v999_v53 = vpop.f32.mrb[35].mxu1  ;;  %v1061_v1 = vadd.f32 %v1005_v32, %v212_v51  ;;  %v1890_v55 = vunpack.c.h.bf16 %v1985_v58 }
 0x2c4   :  { %v1000_v60 = vadd.f32 %v2808_v38, %v999_v53  ;;  %v1059_v41 = vadd.f32 %v997_v43, %v210_v47  ;;  %v214_v39 = vmul.f32 %v1885_v56, %v2818_v6  ;;  %v215_v29 = vmul.f32 %v1886_v57, %v2824_v10 }
 0x2c5   :  { %v1062_v3 = vadd.f32 %v1008_v59, %v213_v42  ;;  %v217_v16 = vmul.f32 %v1890_v55, %v168_v24 }
 0x2c6   :  { %v1060_v4 = vadd.f32 %v1000_v60, %v211_v48 }
 0x2c7   :  { %v1176_v7 = vpack.c.bf16 %v1062_v3, %v1061_v1  ;;  %v208_v1 = vpop.permute.xlu1 %207 }
 0x2c8   :  { %v2246_v8 = vpop.f32.mrb[36].mxu1  ;;  %v1175_v11 = vpack.c.bf16 %v1060_v4, %v1059_v41 }
 0x2c9   :  { %v1021_v14 = vadd.f32 %v2246_v8, %v2814_v61  ;;  %v1012_v17 = vpop.f32.mrb[37].mxu1  ;;  %v1987_v61 = vld [vmem:[%s3072_s1 + $0x28] sm:$0xff]  }
 0x2ca   :  { %v1013_v38 = vadd.f32 %v2810_v54, %v1012_v17  ;;  %v2247_v18 = vpop.f32.mrb[38].mxu1  ;;  %2272 = vmatprep.mubr.bf16.mxu1 %v1175_v11  ;;  %v1986_v54 = vld [vmem:[%s3072_s1 + $0x20] sm:$0xff]   ;;  %v1897_v30 = vunpack.c.l.bf16 %v1987_v61  ;;  %v1898_v45 = vunpack.c.h.bf16 %v1987_v61  ;;  %v2371_v61 = vld [vmem:[#allocation8 + $0x18] sm:$0xff]  }
 0x2cb   :  { %v1024_v25 = vadd.f32 %v2247_v18, %v2816_v2  ;;  %v1015_v35 = vpop.f32.mrb[39].mxu1  ;;  %2273 = vmatmul.mubr.bf16.vlgmr.msra.gmra.mrb[48].mxu1 %v1176_v7  ;;  %v1065_v12 = vadd.f32 %v1021_v14, %v216_v13  ;;  %v1893_v6 = vunpack.c.l.bf16 %v1986_v54  ;;  %v1894_v31 = vunpack.c.h.bf16 %v1986_v54  ;;  %v2374_v54 = vld [vmem:[#allocation8 + $0x30] sm:$0xff]  }
 0x2cc   :  { %v1016_v22 = vadd.f32 %v2812_v52, %v1015_v35  ;;  %v1063_v23 = vadd.f32 %v1013_v38, %v214_v39  ;;  %v193_v52 = vpop.permute.xlu0 %192  ;;  %v220_v43 = vmul.f32 %v1897_v30, %v183_v62  ;;  %v221_v50 = vmul.f32 %v1898_v45, %v188_v21 }
 0x2cd   :  { %v1066_v24 = vadd.f32 %v1024_v25, %v217_v16  ;;  %v218_v53 = vmul.f32 %v1893_v6, %v2834_v36  ;;  %v219_v47 = vmul.f32 %v1894_v31, %v2846_v49 }
 0x2ce   :  { %v1064_v2 = vadd.f32 %v1016_v22, %v215_v29  ;;  %v2369_v29 = vld [vmem:[#allocation8 + $0x8] sm:$0xff]  }
 0x2cf   :  { %v1178_v46 = vpack.c.bf16 %v1066_v24, %v1065_v12  ;;  %v2373_v22 = vld [vmem:[#allocation8 + $0x28] sm:$0xff]   ;;  %v2375_v12 = vld [vmem:[#allocation8 + $0x38] sm:$0xff]  }
 0x2d0   :  { %v2250_v10 = vpop.f32.mrb[40].mxu1  ;;  %v1177_v34 = vpack.c.bf16 %v1064_v2, %v1063_v23  ;;  %v203_v4 = vpop.permute.xlu0 %202 }
 0x2d1   :  { %v1037_v40 = vadd.f32 %v2250_v10, %v2826_v15  ;;  %v1028_v32 = vpop.f32.mrb[41].mxu1  ;;  %v1989_v15 = vld [vmem:[%s3072_s1 + $0x38] sm:$0xff]  }
 0x2d2   :  { %v1029_v33 = vadd.f32 %v2820_v5, %v1028_v32  ;;  %v2251_v42 = vpop.f32.mrb[42].mxu1  ;;  %2276 = vmatprep.mubr.bf16.mxu1 %v1177_v34  ;;  %v1988_v5 = vld [vmem:[%s3072_s1 + $0x30] sm:$0xff]   ;;  %v1906_v62 = vunpack.c.h.bf16 %v1989_v15  ;;  %v1905_v3 = vunpack.c.l.bf16 %v1989_v15 }
 0x2d3   :  { %v1040_v51 = vadd.f32 %v2251_v42, %v2828_v19  ;;  %v1031_v59 = vpop.f32.mrb[43].mxu1  ;;  %2277 = vmatmul.mubr.bf16.gmra.mrb[52].mxu1 %v1178_v46  ;;  %v1069_v58 = vadd.f32 %v1037_v40, %v220_v43  ;;  %v1902_v41 = vunpack.c.h.bf16 %v1988_v5  ;;  %v1901_v49 = vunpack.c.l.bf16 %v1988_v5 }
 0x2d4   :  { %v1032_v48 = vadd.f32 %v2822_v9, %v1031_v59  ;;  %v1067_v44 = vadd.f32 %v1029_v33, %v218_v53  ;;  %v225_v8 = vmul.f32 %v1906_v62, %v208_v1  ;;  %v224_v11 = vmul.f32 %v1905_v3, %v203_v4 }
 0x2d5   :  { %v1070_v60 = vadd.f32 %v1040_v51, %v221_v50  ;;  %v223_v38 = vmul.f32 %v1902_v41, %v198_v37  ;;  %v222_v18 = vmul.f32 %v1901_v49, %v193_v52 }
 0x2d6   :  { %v1068_v19 = vadd.f32 %v1032_v48, %v219_v47 }
 0x2d7   :  { %v1180_v36 = vpack.c.bf16 %v1070_v60, %v1069_v58 }
 0x2d8   :  { %v2254_v63 = vpop.f32.mrb[44].mxu1  ;;  %v1179_v55 = vpack.c.bf16 %v1068_v19, %v1067_v44 }
 0x2d9   :  { %v1053_v7 = vadd.f32 %v2254_v63, %v2836_v28  ;;  %v1044_v9 = vpop.f32.mrb[45].mxu1 }
 0x2da   :  { %v1045_v56 = vadd.f32 %v2830_v20, %v1044_v9  ;;  %v2255_v57 = vpop.f32.mrb[46].mxu1  ;;  %2280 = vmatprep.mubr.bf16.mxu1 %v1179_v55  ;;  %v2368_v20 = vld [vmem:[#allocation8] sm:$0xff]  }
 0x2db   :  { %v1056_v14 = vadd.f32 %v2255_v57, %v2841_v26  ;;  %v1047_v17 = vpop.f32.mrb[47].mxu1  ;;  %2281 = vmatmul.mubr.bf16.gmra.mrb[56].mxu1 %v1180_v36  ;;  %v1073_v16 = vadd.f32 %v1053_v7, %v224_v11  ;;  %2288 = vmatprep.subr.bf16.mxu1 %v2368_v20  ;;  %v2370_v26 = vld [vmem:[#allocation8 + $0x10] sm:$0xff]  }
 0x2dc   :  { %v1048_v13 = vadd.f32 %v2832_v27, %v1047_v17  ;;  %v1071_v25 = vadd.f32 %v1045_v56, %v222_v18  ;;  %2289 = vmatpush3.bf16.msra.mxu1 %v2368_v20  ;;  %v2372_v27 = vld [vmem:[#allocation8 + $0x20] sm:$0xff]  }
 0x2dd   :  { %v1074_v21 = vadd.f32 %v1056_v14, %v225_v8  ;;  %2290 = vmatprep.subr.bf16.mxu1 %v2369_v29 }
 0x2de   :  { %v1072_v35 = vadd.f32 %v1048_v13, %v223_v38 }
 0x2df   :  { %v1182_v28 = vpack.c.bf16 %v1074_v21, %v1073_v16 }
 0x2e0   :  { %v1181_v39 = vpack.c.bf16 %v1072_v35, %v1071_v25  ;;  %2291 = vmatpush3.bf16.msra.mxu1 %v2369_v29 }
 0x2e1   :  { %2292 = vmatprep.subr.bf16.mxu1 %v2370_v26 }
 0x2e2   :  { %2284 = vmatprep.mubr.bf16.mxu1 %v1181_v39 }
 0x2e3   :  { %2285 = vmatmul.mubr.bf16.gmra.mrb[60].mxu1 %v1182_v28 }
 0x2e4   :  { %2293 = vmatpush3.bf16.msra.mxu1 %v2370_v26 }
 0x2e5   :  { %2294 = vmatprep.subr.bf16.mxu1 %v2371_v61 }
 0x2e8   :  { %2295 = vmatpush3.bf16.msra.mxu1 %v2371_v61 }
 0x2e9   :  { %2296 = vmatprep.subr.bf16.mxu1 %v2372_v27 }
 0x2ec   :  { %2297 = vmatpush3.bf16.msra.mxu1 %v2372_v27 }
 0x2ed   :  { %2298 = vmatprep.subr.bf16.mxu1 %v2373_v22 }
 0x2f0   :  { %2299 = vmatpush3.bf16.msra.mxu1 %v2373_v22 }
 0x2f1   :  { %2300 = vmatprep.subr.bf16.mxu1 %v2374_v54 }
 0x2f4   :  { %2301 = vmatpush3.bf16.msra.mxu1 %v2374_v54 }
 0x2f5   :  { %2302 = vmatprep.subr.bf16.mxu1 %v2375_v12 }
 0x2f8   :  { %2303 = vmatpush3.bf16.msra.mxu1 %v2375_v12 }
 0x39e   :  { %v2884_v24 = vpop.f32.mrb[48].mxu1 }
 0x39f   :  { %v2886_v23 = vpop.f32.mrb[49].mxu1  ;;  %v1368_v31 = vmul.f32 %v2884_v24, %v2884_v24 }
 0x3a0   :  { %v2888_v2 = vpop.f32.mrb[50].mxu1  ;;  %v1366_v45 = vmul.f32 %v2886_v23, %v2886_v23 }
 0x3a1   :  { %v2890_v30 = vpop.f32.mrb[51].mxu1  ;;  %v1369_v37 = vmul.f32 %v2888_v2, %v2888_v2 }
 0x3a2   :  { %v1344_v46 = vadd.f32 %v2890_v30, %v2886_v23  ;;  %v1367_v6 = vmul.f32 %v2890_v30, %v2890_v30 }
 0x3a4   :  { %v1345_v10 = vadd.f32 %v2884_v24, %v1344_v46  ;;  %v1382_v34 = vadd.f32 %v1367_v6, %v1366_v45 }
 0x3a6   :  { %v1383_v40 = vadd.f32 %v1382_v34, %v1368_v31  ;;  %v2903_v32 = vpop.f32.mrb[52].mxu1  ;;  %v1346_v52 = vadd.f32 %v2888_v2, %v1345_v10 }
 0x3a7   :  { %v2906_v33 = vpop.f32.mrb[53].mxu1  ;;  %v1372_v48 = vmul.f32 %v2903_v32, %v2903_v32 }
 0x3a8   :  { %v1347_v42 = vadd.f32 %v1346_v52, %v2906_v33  ;;  %v1370_v43 = vmul.f32 %v2906_v33, %v2906_v33  ;;  %v1384_v50 = vadd.f32 %v1383_v40, %v1369_v37  ;;  %v2911_v51 = vpop.f32.mrb[54].mxu1 }
 0x3a9   :  { %v2913_v59 = vpop.f32.mrb[55].mxu1  ;;  %v1373_v60 = vmul.f32 %v2911_v51, %v2911_v51 }
 0x3aa   :  { %v1385_v53 = vadd.f32 %v1384_v50, %v1370_v43  ;;  %v1348_v47 = vadd.f32 %v1347_v42, %v2913_v59  ;;  %v1371_v15 = vmul.f32 %v2913_v59, %v2913_v59 }
 0x3ac   :  { %v1349_v5 = vadd.f32 %v2903_v32, %v1348_v47  ;;  %v1386_v58 = vadd.f32 %v1385_v53, %v1371_v15 }
 0x3ae   :  { %v1387_v44 = vadd.f32 %v1386_v58, %v1372_v48  ;;  %v2923_v19 = vpop.f32.mrb[56].mxu1  ;;  %v1350_v62 = vadd.f32 %v2911_v51, %v1349_v5  ;;  %v1110_v58 = vlaneseq }
 0x3af   :  { %v2926_v1 = vpop.f32.mrb[57].mxu1  ;;  %v1376_v9 = vmul.f32 %v2923_v19, %v2923_v19 }
 0x3b0   :  { %v1351_v3 = vadd.f32 %v1350_v62, %v2926_v1  ;;  %v1374_v36 = vmul.f32 %v2926_v1, %v2926_v1  ;;  %v1388_v41 = vadd.f32 %v1387_v44, %v1373_v60  ;;  %v2931_v49 = vpop.f32.mrb[58].mxu1  ;;  %v1111_v60 = vshrl.u32 %v1110_v58, 7  ;;  %v1407_v62 = vld [vmem:[%s3076_s5] sm:$0x1] }
 0x3b1   :  { %v2933_v4 = vpop.f32.mrb[59].mxu1  ;;  %v1377_v8 = vmul.f32 %v2931_v49, %v2931_v49 }
 0x3b2   :  { %v1389_v63 = vadd.f32 %v1388_v41, %v1374_v36  ;;  %v1352_v55 = vadd.f32 %v1351_v3, %v2933_v4  ;;  %v1375_v7 = vmul.f32 %v2933_v4, %v2933_v4  ;;  %v1117_v44 = vadd.s32 48, %v1111_v60 }
 0x3b3   :  { %v2957_v3 = vsub.s32 0, %v1111_v60 }
 0x3b4   :  { %v1353_v56 = vadd.f32 %v2923_v19, %v1352_v55  ;;  %v1390_v57 = vadd.f32 %v1389_v63, %v1375_v7  ;;  %vm1133_vm2 = vcmp.lt.s32.totalorder %v1117_v44, 50  ;;  %v1411_v63 = vld [vmem:[%s3077_s6] sm:$0x1] }
 0x3b6   :  { %v1391_v11 = vadd.f32 %v1390_v57, %v1376_v9  ;;  %v2943_v14 = vpop.f32.mrb[60].mxu1  ;;  %v1354_v17 = vadd.f32 %v2931_v49, %v1353_v56  ;;  %v1858_v9 = vsel %vm1133_vm2, 1.0, %v2479_v0 }
 0x3b7   :  { %v1329_v38 = vpop.f32.mrb[61].mxu1  ;;  %v1380_v20 = vmul.f32 %v2943_v14, %v2943_v14 }
 0x3b8   :  { %v1355_v18 = vadd.f32 %v1354_v17, %v1329_v38  ;;  %v1378_v13 = vmul.f32 %v1329_v38, %v1329_v38  ;;  %v1392_v16 = vadd.f32 %v1391_v11, %v1377_v8  ;;  %v2946_v21 = vpop.f32.mrb[62].mxu1 }
 0x3b9   :  { %v1332_v25 = vpop.f32.mrb[63].mxu1  ;;  %v1381_v61 = vmul.f32 %v2946_v21, %v2946_v21 }
 0x3ba   :  { %v1393_v35 = vadd.f32 %v1392_v16, %v1378_v13  ;;  %v1356_v28 = vadd.f32 %v1355_v18, %v1332_v25  ;;  %v1379_v39 = vmul.f32 %v1332_v25, %v1332_v25 }
 0x3bc   :  { %v1357_v29 = vadd.f32 %v2943_v14, %v1356_v28  ;;  %v1394_v26 = vadd.f32 %v1393_v35, %v1379_v39 }
 0x3be   :  { %v1358_v27 = vadd.f32 %v2946_v21, %v1357_v29  ;;  %v1395_v22 = vadd.f32 %v1394_v26, %v1380_v20 }
 0x3c0   :  { %v1359_v54 = vrot.slane %v1358_v27, 4  ;;  %v1396_v12 = vadd.f32 %v1395_v22, %v1381_v61 }
 0x3c2   :  { %v1360_v45 = vadd.f32 %v1359_v54, %v1358_v27  ;;  %v1397_v46 = vrot.slane %v1396_v12, 4 }
 0x3c4   :  { %v1361_v6 = vrot.slane %v1360_v45, 2  ;;  %v1398_v31 = vadd.f32 %v1397_v46, %v1396_v12 }
 0x3c6   :  { %v1362_v10 = vadd.f32 %v1361_v6, %v1360_v45  ;;  %v1399_v34 = vrot.slane %v1398_v31, 2 }
 0x3c8   :  { %v1363_v37 = vrot.slane %v1362_v10, 1  ;;  %v1400_v40 = vadd.f32 %v1399_v34, %v1398_v31 }
 0x3ca   :  { %v1364_v52 = vadd.f32 %v1363_v37, %v1362_v10  ;;  %v1401_v42 = vrot.slane %v1400_v40, 1 }
 0x3cc   :  { %v1365_v43 = vmul.f32 0.02, %v1364_v52  ;;  %v1402_v50 = vadd.f32 %v1401_v42, %v1400_v40 }
 0x3ce   :  { %v1403_v53 = vmul.f32 0.02, %v1402_v50  ;;  %v1404_v47 = vmul.f32 %v1365_v43, %v1365_v43 }
 0x3d0   :  { %v1405_v15 = vsub.f32 %v1403_v53, %v1404_v47 }
 0x3d2   :  { %v1406_v48 = vmax.f32 %v1405_v15, 0.0 }
 0x3d4   :  { %v1408_v5 = vadd.f32 1e-05, %v1406_v48 }
 0x3d6   :  { %2376 = vrsqrt.f32 %v1408_v5 }
 0x3e0   :  { %v2377_v36 = vpop.eup %2376 }
 0x3e1   :  { %v1410_v41 = vmul.f32 %v2377_v36, %v1407_v62 }
 0x3e3   :  { %v1412_v55 = vmul.f32 %v1410_v41, %v1365_v43  ;;  %v1418_v7 = vrot.slane %v1410_v41, %v2957_v3 }
 0x3e5   :  { %v1413_v56 = vsub.f32 %v1411_v63, %v1412_v55  ;;  %v1433_v57 = vmul.f32 %v1418_v7, %v1332_v25  ;;  %v1420_v8 = vmul.f32 %v1418_v7, %v2886_v23  ;;  %v1421_v11 = vmul.f32 %v1418_v7, %v2890_v30 }
 0x3e6   :  { %v1422_v17 = vmul.f32 %v2884_v24, %v1418_v7  ;;  %v1423_v18 = vmul.f32 %v2888_v2, %v1418_v7  ;;  %v1424_v13 = vmul.f32 %v1418_v7, %v2906_v33  ;;  %v1425_v16 = vmul.f32 %v1418_v7, %v2913_v59 }
 0x3e7   :  { %v1440_v35 = vrot.slane %v1413_v56, %v2957_v3  ;;  %v1426_v28 = vmul.f32 %v2903_v32, %v1418_v7  ;;  %v1427_v0 = vmul.f32 %v2911_v51, %v1418_v7  ;;  %v1428_v25 = vmul.f32 %v1418_v7, %v2926_v1 }
 0x3e8   :  { %v1429_v23 = vmul.f32 %v1418_v7, %v2933_v4  ;;  %v1430_v30 = vmul.f32 %v2923_v19, %v1418_v7  ;;  %v1431_v24 = vmul.f32 %v2931_v49, %v1418_v7  ;;  %v1432_v39 = vmul.f32 %v1418_v7, %v1329_v38 }
 0x3e9   :  { %v1455_v2 = vadd.f32 %v1440_v35, %v1433_v57  ;;  %v1442_v20 = vadd.f32 %v1440_v35, %v1420_v8  ;;  %v1443_v33 = vadd.f32 %v1440_v35, %v1421_v11  ;;  %v1444_v29 = vadd.f32 %v1440_v35, %v1422_v17 }
 0x3ea   :  { %v1445_v59 = vadd.f32 %v1440_v35, %v1423_v18  ;;  %v1446_v26 = vadd.f32 %v1440_v35, %v1424_v13  ;;  %v1447_v61 = vadd.f32 %v1440_v35, %v1425_v16  ;;  %v1448_v27 = vadd.f32 %v1440_v35, %v1426_v28 }
 0x3eb   :  { %v1471_v32 = vmax.f32 %v1455_v2, 0.0  ;;  %v1458_v22 = vmax.f32 %v1442_v20, 0.0  ;;  %v1459_v51 = vmax.f32 %v1443_v33, 0.0  ;;  %v1460_v54 = vmax.f32 %v1444_v29, 0.0 }
 0x3ec   :  { %v1461_v1 = vmax.f32 %v1445_v59, 0.0  ;;  %v1462_v12 = vmax.f32 %v1446_v26, 0.0  ;;  %v1463_v4 = vmax.f32 %v1447_v61, 0.0  ;;  %v1449_v45 = vadd.f32 %v1440_v35, %v1427_v0 }
 0x3ed   :  { %v1490_v19 = vpack.c.bf16 %v1459_v51, %v1458_v22  ;;  %v1464_v46 = vmax.f32 %v1448_v27, 0.0  ;;  %v1450_v49 = vadd.f32 %v1440_v35, %v1428_v25  ;;  %v1451_v38 = vadd.f32 %v1440_v35, %v1429_v23 }
 0x3ee   :  { %v1491_v6 = vpack.c.bf16 %v1461_v1, %v1460_v54  ;;  %v1492_v31 = vpack.c.bf16 %v1463_v4, %v1462_v12  ;;  %v1465_v10 = vmax.f32 %v1449_v45, 0.0  ;;  %v1452_v34 = vadd.f32 %v1440_v35, %v1430_v30 }
 0x3ef   :  { %2304 = vmatprep.mubr.bf16.mxu1 %v1490_v19  ;;  %v1480_v37 = vmul.f32 %v1858_v9, %v1464_v46  ;;  %v1466_v40 = vmax.f32 %v1450_v49, 0.0  ;;  %v1467_v52 = vmax.f32 %v1451_v38, 0.0  ;;  %v1453_v42 = vadd.f32 %v1440_v35, %v1431_v24 }
 0x3f0   :  { %2305 = vmatmul.mubr.bf16.vlgmr.msra.gmra.mrb[64].mxu1 %v1491_v6  ;;  %v1481_v43 = vmul.f32 0.0, %v1465_v10  ;;  %v1468_v50 = vmax.f32 %v1452_v34, 0.0  ;;  %v1454_v53 = vadd.f32 %v1440_v35, %v1432_v39  ;;  %v1487_v47 = vmul.f32 0.0, %v1471_v32 }
 0x3f1   :  { %2308 = vmatprep.mubr.bf16.mxu1 %v1492_v31  ;;  %v1482_v15 = vmul.f32 0.0, %v1466_v40  ;;  %v1483_v48 = vmul.f32 0.0, %v1467_v52  ;;  %v1469_v5 = vmax.f32 %v1453_v42, 0.0  ;;  %v1434_v58 = vmul.f32 %v2943_v14, %v1418_v7 }
 0x3f2   :  { %v1493_v60 = vpack.c.bf16 %v1481_v43, %v1480_v37  ;;  %v1484_v44 = vmul.f32 0.0, %v1468_v50  ;;  %v1470_v62 = vmax.f32 %v1454_v53, 0.0  ;;  %v1435_v36 = vmul.f32 %v2946_v21, %v1418_v7 }
 0x3f3   :  { %v1494_v41 = vpack.c.bf16 %v1483_v48, %v1482_v15  ;;  %v1485_v63 = vmul.f32 0.0, %v1469_v5  ;;  %v1456_v55 = vadd.f32 %v1440_v35, %v1434_v58 }
 0x3f4   :  { %v1486_v9 = vmul.f32 0.0, %v1470_v62  ;;  %v1457_v56 = vadd.f32 %v1440_v35, %v1435_v36 }
 0x3f5   :  { %v1495_v57 = vpack.c.bf16 %v1485_v63, %v1484_v44  ;;  %v1472_v8 = vmax.f32 %v1456_v55, 0.0 }
 0x3f6   :  { %v1496_v11 = vpack.c.bf16 %v1487_v47, %v1486_v9  ;;  %v1473_v17 = vmax.f32 %v1457_v56, 0.0 }
 0x3f7   :  { %v1488_v18 = vmul.f32 0.0, %v1472_v8 }
 0x3f8   :  { %2309 = vmatmul.mubr.bf16.gmra.mrb[68].mxu1 %v1493_v60  ;;  %v1489_v13 = vmul.f32 0.0, %v1473_v17 }
 0x3f9   :  { %2312 = vmatprep.mubr.bf16.mxu1 %v1494_v41 }
 0x3fa   :  { %v1497_v16 = vpack.c.bf16 %v1489_v13, %v1488_v18 }
 0x400   :  { %2313 = vmatmul.mubr.bf16.gmra.mrb[72].mxu1 %v1495_v57 }
 0x401   :  { %2316 = vmatprep.mubr.bf16.mxu1 %v1496_v11 }
 0x408   :  { %2317 = vmatmul.mubr.bf16.gmra.mrb[76].mxu1 %v1497_v16 }
 0x4c3   :  { %v2979_v14 = vpop.f32.mrb[64].mxu1 }
 0x4c4   :  { %v2981_v21 = vpop.f32.mrb[65].mxu1  ;;  %v1683_v23 = vmul.f32 %v2979_v14, %v2979_v14 }
 0x4c5   :  { %v2983_v7 = vpop.f32.mrb[66].mxu1  ;;  %v1681_v35 = vmul.f32 %v2981_v21, %v2981_v21 }
 0x4c6   :  { %v2985_v28 = vpop.f32.mrb[67].mxu1  ;;  %v1684_v39 = vmul.f32 %v2983_v7, %v2983_v7 }
 0x4c7   :  { %v1659_v0 = vadd.f32 %v2985_v28, %v2981_v21  ;;  %v1682_v25 = vmul.f32 %v2985_v28, %v2985_v28 }
 0x4c9   :  { %v1660_v30 = vadd.f32 %v2979_v14, %v1659_v0  ;;  %v1697_v24 = vadd.f32 %v1682_v25, %v1681_v35 }
 0x4cb   :  { %v1698_v2 = vadd.f32 %v1697_v24, %v1683_v23  ;;  %v2998_v20 = vpop.f32.mrb[68].mxu1  ;;  %v1661_v33 = vadd.f32 %v2983_v7, %v1660_v30 }
 0x4cc   :  { %v3001_v29 = vpop.f32.mrb[69].mxu1  ;;  %v1687_v1 = vmul.f32 %v2998_v20, %v2998_v20 }
 0x4cd   :  { %v1662_v59 = vadd.f32 %v1661_v33, %v3001_v29  ;;  %v1685_v26 = vmul.f32 %v3001_v29, %v3001_v29  ;;  %v1699_v61 = vadd.f32 %v1698_v2, %v1684_v39  ;;  %v3006_v27 = vpop.f32.mrb[70].mxu1 }
 0x4ce   :  { %v3008_v32 = vpop.f32.mrb[71].mxu1  ;;  %v1688_v45 = vmul.f32 %v3006_v27, %v3006_v27 }
 0x4cf   :  { %v1700_v22 = vadd.f32 %v1699_v61, %v1685_v26  ;;  %v1663_v51 = vadd.f32 %v1662_v59, %v3008_v32  ;;  %v1686_v54 = vmul.f32 %v3008_v32, %v3008_v32 }
 0x4d1   :  { %v1664_v12 = vadd.f32 %v2998_v20, %v1663_v51  ;;  %v1701_v4 = vadd.f32 %v1700_v22, %v1686_v54 }
 0x4d3   :  { %v1702_v19 = vadd.f32 %v1701_v4, %v1687_v1  ;;  %v3018_v46 = vpop.f32.mrb[72].mxu1  ;;  %v1665_v49 = vadd.f32 %v3006_v27, %v1664_v12  ;;  %v1722_v4 = vld [vmem:[%s3079_s8] sm:$0x1]  ;;  %s2482_s8 = smov [#allocation9]  }
 0x4d4   :  { %v3021_v38 = vpop.f32.mrb[73].mxu1  ;;  %v1691_v43 = vmul.f32 %v3018_v46, %v3018_v46 }
 0x4d5   :  { %v1666_v6 = vadd.f32 %v1665_v49, %v3021_v38  ;;  %v1689_v31 = vmul.f32 %v3021_v38, %v3021_v38  ;;  %v1703_v10 = vadd.f32 %v1702_v19, %v1688_v45  ;;  %v3026_v34 = vpop.f32.mrb[74].mxu1  ;;  %v1726_v49 = vld [vmem:[%s3080_s9] sm:$0x1]  ;;  %s1810_s9 = sshll.u32 %s2482_s8, 4  ;;  %s1811_s9 = int_to_ptr.vmem [resolvable:$true] %s1810_s9 }
 0x4d6   :  { %v3028_v37 = vpop.f32.mrb[75].mxu1  ;;  %v1692_v47 = vmul.f32 %v3026_v34, %v3026_v34  ;;  %s2446_s21 = scalar_lea.vmem %s1811_s9, 2048  ;;  %p2451_p11 = scmp.lt.s32.totalorder %s1811_s9, %s1811_s9 }
 0x4d7   :  { %v1704_v40 = vadd.f32 %v1703_v10, %v1689_v31  ;;  %v1667_v52 = vadd.f32 %v1666_v6, %v3028_v37  ;;  %v1690_v42 = vmul.f32 %v3028_v37, %v3028_v37  ;;  %p2447_p10 = scmp.ne.s32.totalorder %s1811_s9, %s2446_s21  ;;  %p2452_p12 = scmp.lt.s32.totalorder %s2446_s21, %s2446_s21 }
 0x4d9   :  { %v1668_v50 = vadd.f32 %v3018_v46, %v1667_v52  ;;  %v1705_v53 = vadd.f32 %v1704_v40, %v1690_v42  ;;  %p2453_p13 = por %p2452_p12, %p2451_p11 }
 0x4db   :  { %v1706_v15 = vadd.f32 %v1705_v53, %v1691_v43  ;;  %v2318_v48 = vpop.f32.mrb[76].mxu1  ;;  %v1669_v5 = vadd.f32 %v3026_v34, %v1668_v50  ;;  %p2454_p0 = pnand %p2453_p13, %p2447_p10 }
 0x4dc   :  { %v1644_v58 = vpop.f32.mrb[77].mxu1  ;;  %v1695_v56 = vmul.f32 %v2318_v48, %v2318_v48 }
 0x4dd   :  { %v1670_v60 = vadd.f32 %v1669_v5, %v1644_v58  ;;  %v1693_v44 = vmul.f32 %v1644_v58, %v1644_v58  ;;  %v1707_v62 = vadd.f32 %v1706_v15, %v1692_v47  ;;  %v2319_v36 = vpop.f32.mrb[78].mxu1 }
 0x4de   :  { %v1647_v41 = vpop.f32.mrb[79].mxu1  ;;  %v1696_v11 = vmul.f32 %v2319_v36, %v2319_v36 }
 0x4df   :  { %v1708_v63 = vadd.f32 %v1707_v62, %v1693_v44  ;;  %v1671_v55 = vadd.f32 %v1670_v60, %v1647_v41  ;;  %v1694_v9 = vmul.f32 %v1647_v41, %v1647_v41 }
 0x4e1   :  { %v1672_v57 = vadd.f32 %v2318_v48, %v1671_v55  ;;  %v1709_v8 = vadd.f32 %v1708_v63, %v1694_v9 }
 0x4e3   :  { %v1673_v17 = vadd.f32 %v2319_v36, %v1672_v57  ;;  %v1710_v18 = vadd.f32 %v1709_v8, %v1695_v56 }
 0x4e5   :  { %v1674_v13 = vrot.slane %v1673_v17, 4  ;;  %v1711_v16 = vadd.f32 %v1710_v18, %v1696_v11 }
 0x4e7   :  { %v1675_v35 = vadd.f32 %v1674_v13, %v1673_v17  ;;  %v1712_v0 = vrot.slane %v1711_v16, 4 }
 0x4e9   :  { %v1676_v25 = vrot.slane %v1675_v35, 2  ;;  %v1713_v23 = vadd.f32 %v1712_v0, %v1711_v16 }
 0x4eb   :  { %v1677_v30 = vadd.f32 %v1676_v25, %v1675_v35  ;;  %v1714_v24 = vrot.slane %v1713_v23, 2 }
 0x4ed   :  { %v1678_v39 = vrot.slane %v1677_v30, 1  ;;  %v1715_v2 = vadd.f32 %v1714_v24, %v1713_v23 }
 0x4ef   :  { %v1679_v33 = vadd.f32 %v1678_v39, %v1677_v30  ;;  %v1716_v59 = vrot.slane %v1715_v2, 1 }
 0x4f1   :  { %v1680_v26 = vmul.f32 0.02, %v1679_v33  ;;  %v1717_v61 = vadd.f32 %v1716_v59, %v1715_v2 }
 0x4f3   :  { %v1718_v22 = vmul.f32 0.02, %v1717_v61  ;;  %v1719_v51 = vmul.f32 %v1680_v26, %v1680_v26 }
 0x4f5   :  { %v1720_v54 = vsub.f32 %v1718_v22, %v1719_v51 }
 0x4f7   :  { %v1721_v1 = vmax.f32 %v1720_v54, 0.0 }
 0x4f9   :  { %v1723_v12 = vadd.f32 1e-05, %v1721_v1 }
 0x4fb   :  { %2378 = vrsqrt.f32 %v1723_v12 }
 0x505   :  { %v2379_v45 = vpop.eup %2378 }
 0x506   :  { %v1725_v19 = vmul.f32 %v2379_v45, %v1722_v4 }
 0x508   :  { %v1727_v6 = vmul.f32 %v1725_v19, %v1680_v26  ;;  %v1733_v31 = vrot.slane %v1725_v19, %v2957_v3 }
 0x50a   :  { %v1728_v10 = vsub.f32 %v1726_v49, %v1727_v6  ;;  %v1748_v40 = vmul.f32 %v1733_v31, %v1647_v41  ;;  %v1735_v52 = vmul.f32 %v1733_v31, %v2981_v21  ;;  %v1736_v42 = vmul.f32 %v1733_v31, %v2985_v28 }
 0x50b   :  { %v1737_v43 = vmul.f32 %v2979_v14, %v1733_v31  ;;  %v1738_v50 = vmul.f32 %v2983_v7, %v1733_v31  ;;  %v1739_v53 = vmul.f32 %v1733_v31, %v3001_v29  ;;  %v1740_v47 = vmul.f32 %v1733_v31, %v3008_v32 }
 0x50c   :  { %v1755_v15 = vrot.slane %v1728_v10, %v2957_v3  ;;  %v1741_v5 = vmul.f32 %v2998_v20, %v1733_v31  ;;  %v1742_v60 = vmul.f32 %v3006_v27, %v1733_v31  ;;  %v1743_v44 = vmul.f32 %v1733_v31, %v3021_v38 }
 0x50d   :  { %v1744_v21 = vmul.f32 %v1733_v31, %v3028_v37  ;;  %v1745_v28 = vmul.f32 %v3018_v46, %v1733_v31  ;;  %v1746_v14 = vmul.f32 %v3026_v34, %v1733_v31  ;;  %v1747_v62 = vmul.f32 %v1733_v31, %v1644_v58 }
 0x50e   :  { %v1770_v7 = vadd.f32 %v1755_v15, %v1748_v40  ;;  %v1749_v41 = vmul.f32 %v2318_v48, %v1733_v31  ;;  %v1750_v29 = vmul.f32 %v2319_v36, %v1733_v31  ;;  %v1757_v63 = vadd.f32 %v1755_v15, %v1735_v52 }
 0x50f   :  { %v1758_v32 = vadd.f32 %v1755_v15, %v1736_v42  ;;  %v1759_v55 = vadd.f32 %v1755_v15, %v1737_v43  ;;  %v1760_v3 = vadd.f32 %v1755_v15, %v1738_v50  ;;  %v1761_v9 = vadd.f32 %v1755_v15, %v1739_v53 }
 0x510   :  { %v1786_v20 = vmax.f32 %v1770_v7, 0.0  ;;  %v1762_v56 = vadd.f32 %v1755_v15, %v1740_v47  ;;  %v1763_v27 = vadd.f32 %v1755_v15, %v1741_v5  ;;  %v1764_v57 = vadd.f32 %v1755_v15, %v1742_v60 }
 0x511   :  { %v1765_v38 = vadd.f32 %v1755_v15, %v1743_v44  ;;  %v1766_v8 = vadd.f32 %v1755_v15, %v1744_v21  ;;  %v1767_v37 = vadd.f32 %v1755_v15, %v1745_v28  ;;  %v1768_v11 = vadd.f32 %v1755_v15, %v1746_v14 }
 0x512   :  { %1802 = vst [vmem:[#allocation9 + $0x68] sm:$0xff] %v1786_v20  ;;  %v1769_v46 = vadd.f32 %v1755_v15, %v1747_v62  ;;  %v1771_v34 = vadd.f32 %v1755_v15, %v1749_v41  ;;  %v1772_v58 = vadd.f32 %v1755_v15, %v1750_v29  ;;  %v1773_v17 = vmax.f32 %v1757_v63, 0.0 }
 0x513   :  { %v1774_v48 = vmax.f32 %v1758_v32, 0.0  ;;  %v1775_v36 = vmax.f32 %v1759_v55, 0.0  ;;  %v1776_v18 = vmax.f32 %v1760_v3, 0.0  ;;  %v1777_v13 = vmax.f32 %v1761_v9, 0.0 }
 0x514   :  { %v1778_v16 = vmax.f32 %v1762_v56, 0.0  ;;  %v1779_v35 = vmax.f32 %v1763_v27, 0.0  ;;  %v1780_v0 = vmax.f32 %v1764_v57, 0.0  ;;  %v1781_v25 = vmax.f32 %v1765_v38, 0.0  ;;  %1789 = vst [vmem:[#allocation9] sm:$0xff] %v1773_v17 }
 0x515   :  { %v1782_v23 = vmax.f32 %v1766_v8, 0.0  ;;  %v1783_v30 = vmax.f32 %v1767_v37, 0.0  ;;  %v1784_v24 = vmax.f32 %v1768_v11, 0.0  ;;  %v1785_v39 = vmax.f32 %v1769_v46, 0.0  ;;  %1790 = vst [vmem:[#allocation9 + $0x8] sm:$0xff] %v1774_v48  ;;  %1791 = vst [vmem:[#allocation9 + $0x10] sm:$0xff] %v1775_v36 }
 0x516   :  { %1792 = vst [vmem:[#allocation9 + $0x18] sm:$0xff] %v1776_v18  ;;  %1793 = vst [vmem:[#allocation9 + $0x20] sm:$0xff] %v1777_v13  ;;  %v1787_v2 = vmax.f32 %v1771_v34, 0.0  ;;  %v1788_v33 = vmax.f32 %v1772_v58, 0.0 }
 0x517   :  { %1794 = vst [vmem:[#allocation9 + $0x28] sm:$0xff] %v1778_v16  ;;  %1795 = vst [vmem:[#allocation9 + $0x30] sm:$0xff] %v1779_v35 }
 0x518   :  { %1796 = vst [vmem:[#allocation9 + $0x38] sm:$0xff] %v1780_v0  ;;  %1797 = vst [vmem:[#allocation9 + $0x40] sm:$0xff] %v1781_v25 }
 0x519   :  { %1798 = vst [vmem:[#allocation9 + $0x48] sm:$0xff] %v1782_v23  ;;  %1799 = vst [vmem:[#allocation9 + $0x50] sm:$0xff] %v1783_v30 }
 0x51a   :  { %1800 = vst [vmem:[#allocation9 + $0x58] sm:$0xff] %v1784_v24  ;;  %1801 = vst [vmem:[#allocation9 + $0x60] sm:$0xff] %v1785_v39 }
 0x51b   :  { %1803 = vst [vmem:[#allocation9 + $0x70] sm:$0xff] %v1787_v2  ;;  %1804 = vst [vmem:[#allocation9 + $0x78] sm:$0xff] %v1788_v33 }
 0x51c   :  { %2457 = shalt.err (!%p2454_p0)
}
 0x51d   :  { %s2458_s24 = scalar_lea.hbm %s3081_s10, 2048 }
 0x51e   :  { %p2459_p1 = scmp.ne.s32.totalorder %s3081_s10, %s2458_s24  ;;  %p2462_p2 = scmp.lt.u32.totalorder %s2458_s24, %s3081_s10 }
 0x520   :  { %p2464_p3 = pnand %p2462_p2, %p2459_p1 }
 0x522   :  { %2467 = shalt.err (!%p2464_p3)
}
 0x523   :  { %s2483_s30 = smov 128   ;;  %s2484_s2 = smov 8  }
 0x524   :  { %1816 = dma.vmem_to_hbm [thread:$0]  %s1811_s9, 2048, %s3081_s10, [#allocation5], %s2483_s30, %s2483_s30, %s2484_s2  }
 0x525   :  { %2472 = dma.done.wait [#allocation5], 2048  }
 0x526   :  { %2473 = vsyncadd [#allocation5], 4294965248 }
 0x527   :  { %1820 = vsyncpa [#allocation4], 1 }
 0x528   :  { %1821 = vsyncpa [#allocation7], 1 }
 0x529   :  { %1822 = vsyncpa [#allocation5], 1 }

</bundles_post_ra>
